<compile_context>
chip_gen: v7x
topology: tpu7x:2x2x1
jax: 0.10.0
libtpu: 0.0.40
codegen_flags: <defaults>
</compile_context>

<pallas_src>
import numpy as np

import jax
import jax.numpy as jnp
from jax.experimental import pallas as pl
from jax.experimental.pallas import tpu as pltpu


def _fullblock(shape):
    """BlockSpec covering the whole array (grid=(1,))."""
    return pl.BlockSpec(shape, lambda i: (0,) * len(shape))


# ----------------------------------------------------------------------------
# Kernels.  Everything is a chain of small 2-D MXU matmuls on VMEM-resident
# values; intermediates (conv output, latent) never touch HBM.
# ----------------------------------------------------------------------------
def _make_encode_body(B, CO, HID):
    """relu(conv) -> relu(fc) as in-kernel matmuls.  Returns latent (B, HID) f32."""

    def body(pt_ref, cw_ref, cb_ref, fw_ref, fb_ref):
        cw = cw_ref[...]                                   # (CO, 36)  bf16
        cb = cb_ref[...]                                   # (CO, 1)   f32
        convs = []
        for b in range(B):                                 # static unroll (B=2)
            # conv as a GEMM over the 36 patch elements: (CO,36)@(36,S) -> (CO,S)
            c = jnp.dot(cw, pt_ref[b], preferred_element_type=jnp.float32)
            convs.append(jnp.maximum(c + cb, 0.0).astype(jnp.bfloat16))
        # fc: latent[b,h] = sum_{o,s} conv[b,o,s] * fc_w[o,s,h]
        # (fc_w rows were permuted on the host to match the torch flatten order)
        accs = [None] * B
        for o in range(CO):                                # static unroll (CO=8)
            fw_o = fw_ref[o]                               # (S, HID) bf16
            for b in range(B):
                t = jnp.dot(convs[b][o:o + 1, :], fw_o,
                            preferred_element_type=jnp.float32)   # (1, HID)
                accs[b] = t if accs[b] is None else accs[b] + t
        lat = jnp.concatenate(accs, axis=0) + fb_ref[...]  # (B, HID) f32
        return jnp.maximum(lat, 0.0)

    return body


def _make_kernels(B, CO, HID):
    encode = _make_encode_body(B, CO, HID)

    def encode_kernel(pt_ref, cw_ref, cb_ref, fw_ref, fb_ref, lat_ref):
        lat_ref[...] = encode(pt_ref, cw_ref, cb_ref, fw_ref, fb_ref)

    def full_kernel(pt_ref, cw_ref, cb_ref, fw_ref, fb_ref,
                    act_ref, hw_ref, hb_ref, q_ref, lat_ref, nl_ref):
        lat = encode(pt_ref, cw_ref, cb_ref, fw_ref, fb_ref)      # (B, HID) f32
        lat_ref[...] = lat
        # xa = concat(latent, action): one merged head matmul (q | next_latent).
        xa = jnp.concatenate([lat, act_ref[...]], axis=1).astype(jnp.bfloat16)
        head = (jnp.dot(xa, hw_ref[...], preferred_element_type=jnp.float32)
                + hb_ref[...])                                    # (B, 1+HID)
        # Epilogue extraction: no XLA slice ops after the pallas_call.
        q_ref[...] = head[:, 0:1]
        nl_ref[...] = head[:, 1:1 + HID]

    return encode_kernel, full_kernel


# ----------------------------------------------------------------------------
# Synthetic RL model (deterministic parameters).
#   apply(obs)          -> (latent,)                    [feat_flat is dead -> dropped]
#   apply(obs, action)  -> (q, latent, next_latent)
# ----------------------------------------------------------------------------
def init_params(key, *, c_in=4, c_out=8, k=3, h=16, w=16, hidden=32, act_dim=6):
    oh, ow = h - k + 1, w - k + 1
    flat = c_out * oh * ow
    ks = jax.random.split(key, 8)
    s = 0.1
    return {
        "conv_w": s * jax.random.normal(ks[0], (c_out, c_in, k, k), jnp.float32),
        "conv_b": s * jax.random.normal(ks[1], (c_out,), jnp.float32),
        "fc_w": s * jax.random.normal(ks[2], (flat, hidden), jnp.float32),
        "fc_b": s * jax.random.normal(ks[3], (hidden,), jnp.float32),
        "q_w": s * jax.random.normal(ks[4], (hidden + act_dim, 1), jnp.float32),
        "q_b": s * jax.random.normal(ks[5], (1,), jnp.float32),
        "trans_w": s * jax.random.normal(ks[6], (hidden + act_dim, hidden), jnp.float32),
        "trans_b": s * jax.random.normal(ks[7], (hidden,), jnp.float32),
    }


class SyntheticModel:
    def __init__(self, params, *, h, w):
        c_out, c_in, kh, kw = params["conv_w"].shape
        assert kh == kw
        self.c_in, self.h, self.w, self.k = c_in, h, w, kh
        self.c_out = c_out
        self.oh, self.ow = h - kh + 1, w - kw + 1
        self.s = self.oh * self.ow
        self.kk = c_in * kh * kw
        self.hidden = params["fc_w"].shape[1]
        self.act_dim = params["q_w"].shape[0] - self.hidden
        self.weights = self._pack(params)
        # Shared jitted forwards: every ModelWrapper built on this model reuses
        # ONE compiled executable per signature.
        self._jit_enc = jax.jit(self._apply_enc)
        self._jit_full = jax.jit(self._apply_full)

    # -- one-off host-side weight packing (free at runtime) ------------------
    def _pack(self, p):
        f32 = np.float32
        # raw conv weight, (CO, C*K*K): k index = ci*K*K + ih*K + iw
        cw = np.asarray(p["conv_w"], f32).reshape(self.c_out, self.kk)
        cb = np.asarray(p["conv_b"], f32).reshape(self.c_out, 1)
        # fc weight reshaped so the conv->fc "flatten" becomes pure row indexing:
        # torch flatten order is (co, oh, ow) -> rows (co, s).
        fw = np.asarray(p["fc_w"], f32).reshape(self.c_out, self.s, self.hidden)
        fb = np.asarray(p["fc_b"], f32).reshape(1, self.hidden)
        # merged head: column 0 = q, columns 1..hidden = next latent.
        hw = np.zeros((self.hidden + self.act_dim, 1 + self.hidden), f32)
        hb = np.zeros((1, 1 + self.hidden), f32)
        hw[:, 0] = np.asarray(p["q_w"], f32)[:, 0]
        hw[:, 1:] = np.asarray(p["trans_w"], f32)
        hb[0, 0] = np.asarray(p["q_b"], f32)[0]
        hb[0, 1:] = np.asarray(p["trans_b"], f32)
        return {
            "conv_w": jnp.asarray(cw, jnp.bfloat16),   # (CO, 36)        0.6 KiB
            "conv_b": jnp.asarray(cb),                 # (CO, 1)   f32
            "fc_w": jnp.asarray(fw, jnp.bfloat16),     # (CO, S, 32)     ~100 KiB
            "fc_b": jnp.asarray(fb),                   # (1, 32)   f32
            "head_w": jnp.asarray(hw, jnp.bfloat16),   # (38, 33)        ~2.5 KiB
            "head_b": jnp.asarray(hb),                 # (1, 33)   f32
        }

    # -- im2col: zero-FLOP layout plumbing in the jitted wrapper -------------
    def _im2col(self, obs):
        B = obs.shape[0]
        K, OH, OW = self.k, self.oh, self.ow
        slabs = [obs[:, :, ih:ih + OH, iw:iw + OW]
                 for ih in range(K) for iw in range(K)]          # each (B,C,OH,OW)
        pt = jnp.stack(slabs, axis=2)                            # (B, C, K*K, OH, OW)
        pt = pt.reshape(B, self.kk, self.s)                      # (B, 36, S)
        return pt.astype(jnp.bfloat16)                           # bf16 on the host side

    # -- fused forwards (single pallas_call per branch) ----------------------
    def _apply_enc(self, weights, obs):
        B = obs.shape[0]
        pt = self._im2col(obs)
        enc_kernel, _ = _make_kernels(B, self.c_out, self.hidden)
        flops = 2 * B * (self.c_out * self.s * self.kk
                         + self.c_out * self.s * self.hidden)
        bytes_acc = (pt.size * 2
                     + weights["conv_w"].size * 2 + weights["conv_b"].size * 4
                     + weights["fc_w"].size * 2 + weights["fc_b"].size * 4
                     + B * self.hidden * 4)
        latent = pl.pallas_call(
            enc_kernel,
            out_shape=jax.ShapeDtypeStruct((B, self.hidden), jnp.float32),
            grid=(1,),
            in_specs=[_fullblock(pt.shape),
                      _fullblock(weights["conv_w"].shape),
                      _fullblock(weights["conv_b"].shape),
                      _fullblock(weights["fc_w"].shape),
                      _fullblock(weights["fc_b"].shape)],
            out_specs=_fullblock((B, self.hidden)),
            compiler_params=pltpu.CompilerParams(dimension_semantics=("arbitrary",)),
            cost_estimate=pl.CostEstimate(flops=flops, transcendentals=0,
                                          bytes_accessed=bytes_acc),
        )(pt, weights["conv_w"], weights["conv_b"], weights["fc_w"], weights["fc_b"])
        # model(obs)[0] is the only value any ModelWrapper branch consumes;
        # feat_flat is dead and is neither computed to HBM nor returned.
        return (latent,)

    def _apply_full(self, weights, obs, action):
        B = obs.shape[0]
        pt = self._im2col(obs)
        act = action.astype(jnp.float32)
        _, full_kernel = _make_kernels(B, self.c_out, self.hidden)
        flops = 2 * B * (self.c_out * self.s * self.kk
                         + self.c_out * self.s * self.hidden
                         + (self.hidden + self.act_dim) * (1 + self.hidden))
        bytes_acc = (pt.size * 2
                     + weights["conv_w"].size * 2 + weights["conv_b"].size * 4
                     + weights["fc_w"].size * 2 + weights["fc_b"].size * 4
                     + act.size * 4
                     + weights["head_w"].size * 2 + weights["head_b"].size * 4
                     + B * (1 + 2 * self.hidden) * 4)
        q, latent, next_latent = pl.pallas_call(
            full_kernel,
            out_shape=(jax.ShapeDtypeStruct((B, 1), jnp.float32),
                       jax.ShapeDtypeStruct((B, self.hidden), jnp.float32),
                       jax.ShapeDtypeStruct((B, self.hidden), jnp.float32)),
            grid=(1,),
            in_specs=[_fullblock(pt.shape),
                      _fullblock(weights["conv_w"].shape),
                      _fullblock(weights["conv_b"].shape),
                      _fullblock(weights["fc_w"].shape),
                      _fullblock(weights["fc_b"].shape),
                      _fullblock(act.shape),
                      _fullblock(weights["head_w"].shape),
                      _fullblock(weights["head_b"].shape)],
            out_specs=(_fullblock((B, 1)),
                       _fullblock((B, self.hidden)),
                       _fullblock((B, self.hidden))),
            compiler_params=pltpu.CompilerParams(dimension_semantics=("arbitrary",)),
            cost_estimate=pl.CostEstimate(flops=flops, transcendentals=0,
                                          bytes_accessed=bytes_acc),
        )(pt, weights["conv_w"], weights["conv_b"], weights["fc_w"], weights["fc_b"],
          act, weights["head_w"], weights["head_b"])
        return q, latent, next_latent

    def __call__(self, obs, action=None):
        if action is None:
            return self._jit_enc(self.weights, obs)
        return self._jit_full(self.weights, obs, action)


# ----------------------------------------------------------------------------
# ModelWrapper: exact reproduction of the PyTorch forward dispatch.
# ----------------------------------------------------------------------------
class ModelWrapper:
    def __init__(self, model, action=None, trans=False):
        self.model = model
        self.action = action
        self.trans = trans

    def __call__(self, obs):
        if self.trans:
            return self.model(obs, self.action)[2]
        if self.action is None:
            return self.model(obs)[0]
        return self.model(obs, self.action)[0]


# ----------------------------------------------------------------------------
# Pure-JAX f32 reference of the synthetic model (no Pallas).
# ----------------------------------------------------------------------------
def reference_forward(params, obs, action):
    conv = jax.lax.conv_general_dilated(
        obs, params["conv_w"], window_strides=(1, 1), padding="VALID",
        dimension_numbers=("NCHW", "OIHW", "NCHW"))
    conv = jnp.maximum(conv + params["conv_b"][None, :, None, None], 0.0)
    feat_flat = conv.reshape(obs.shape[0], -1)            # torch .view(B,-1) order
    latent = jnp.maximum(feat_flat @ params["fc_w"] + params["fc_b"], 0.0)
    xa = jnp.concatenate([latent, action], axis=-1)
    q = xa @ params["q_w"] + params["q_b"]
    next_latent = xa @ params["trans_w"] + params["trans_b"]
    return latent, q, next_latent


if __name__ == "__main__":
    key = jax.random.PRNGKey(0)
    k_obs, k_act, k_par = jax.random.split(key, 3)

    B, C, H, W = 2, 4, 16, 16
    ACT_DIM, HIDDEN = 6, 32

    obs = jax.random.normal(k_obs, (B, C, H, W), jnp.float32)       # NCHW
    action = jax.random.normal(k_act, (B, ACT_DIM), jnp.float32)

    params = init_params(k_par, c_in=C, h=H, w=W, hidden=HIDDEN, act_dim=ACT_DIM)
    model = SyntheticModel(params, h=H, w=W)

    # Recommended fused path (perf review): ONE kernel launch yields all three
    # heads for the same (obs, action).
    q, latent, next_latent = model(obs, action)

    # Spec-faithful ModelWrapper dispatch (each branch = one fused Pallas kernel;
    # q/trans branches share the same compiled executable).
    w_latent = ModelWrapper(model)(obs)                              # model(obs)[0]
    w_q = ModelWrapper(model, action=action)(obs)                    # model(obs, a)[0]
    w_next = ModelWrapper(model, action=action, trans=True)(obs)     # model(obs, a)[2]

    jax.block_until_ready((q, latent, next_latent, w_latent, w_q, w_next))

    assert latent.shape == (B, HIDDEN) and latent.dtype == jnp.float32
    assert q.shape == (B, 1) and q.dtype == jnp.float32
    assert next_latent.shape == (B, HIDDEN) and next_latent.dtype == jnp.float32
    assert w_latent.shape == (B, HIDDEN) and w_q.shape == (B, 1)
    assert w_next.shape == (B, HIDDEN)

    # ModelWrapper branches agree with the single fused launch.
    np.testing.assert_allclose(np.asarray(w_q), np.asarray(q), rtol=1e-5, atol=1e-5)
    np.testing.assert_allclose(np.asarray(w_next), np.asarray(next_latent),
                               rtol=1e-5, atol=1e-5)
    np.testing.assert_allclose(np.asarray(w_latent), np.asarray(latent),
                               rtol=1e-5, atol=1e-5)

    # Numerical check vs. the pure-f32 reference (bf16 weights on the MXU with
    # f32 accumulation -> loose tolerance).
    lat_ref, q_ref, nl_ref = reference_forward(params, obs, action)
    np.testing.assert_allclose(np.asarray(latent), np.asarray(lat_ref),
                               rtol=5e-2, atol=5e-2)
    np.testing.assert_allclose(np.asarray(q), np.asarray(q_ref),
                               rtol=5e-2, atol=5e-2)
    np.testing.assert_allclose(np.asarray(next_latent), np.asarray(nl_ref),
                               rtol=5e-2, atol=5e-2)

    print("KERNEL_OK")
</pallas_src>

<mosaic_0001>
module attributes {stable_mosaic.version = 11 : i64} {
  func.func @full_kernel(%arg0: i32, %arg1: memref<2x36x196xbf16, #tpu.memory_space<vmem>>, %arg2: memref<8x36xbf16, #tpu.memory_space<vmem>>, %arg3: memref<8x1xf32, #tpu.memory_space<vmem>>, %arg4: memref<8x196x32xbf16, #tpu.memory_space<vmem>>, %arg5: memref<1x32xf32, #tpu.memory_space<vmem>>, %arg6: memref<2x6xf32, #tpu.memory_space<vmem>>, %arg7: memref<38x33xbf16, #tpu.memory_space<vmem>>, %arg8: memref<1x33xf32, #tpu.memory_space<vmem>>, %arg9: memref<2x1xf32, #tpu.memory_space<vmem>>, %arg10: memref<2x32xf32, #tpu.memory_space<vmem>>, %arg11: memref<2x32xf32, #tpu.memory_space<vmem>>) attributes {dimension_semantics = [#tpu.dimension_semantics<arbitrary>], iteration_bounds = array<i64: 1>, scalar_prefetch = 0 : i64, scratch_operands = 0 : i64, tpu.core_type = #tpu.core_type<tc>, window_params = [{pipeline_mode = #tpu.pipeline_mode<synchronous>, transform_indices = @transform_0, window_bounds = array<i64: 2, 36, 196>}, {pipeline_mode = #tpu.pipeline_mode<synchronous>, transform_indices = @transform_1, window_bounds = array<i64: 8, 36>}, {pipeline_mode = #tpu.pipeline_mode<synchronous>, transform_indices = @transform_2, window_bounds = array<i64: 8, 1>}, {pipeline_mode = #tpu.pipeline_mode<synchronous>, transform_indices = @transform_3, window_bounds = array<i64: 8, 196, 32>}, {pipeline_mode = #tpu.pipeline_mode<synchronous>, transform_indices = @transform_4, window_bounds = array<i64: 1, 32>}, {pipeline_mode = #tpu.pipeline_mode<synchronous>, transform_indices = @transform_5, window_bounds = array<i64: 2, 6>}, {pipeline_mode = #tpu.pipeline_mode<synchronous>, transform_indices = @transform_6, window_bounds = array<i64: 38, 33>}, {pipeline_mode = #tpu.pipeline_mode<synchronous>, transform_indices = @transform_7, window_bounds = array<i64: 1, 33>}, {pipeline_mode = #tpu.pipeline_mode<synchronous>, transform_indices = @transform_8, window_bounds = array<i64: 2, 1>}, {pipeline_mode = #tpu.pipeline_mode<synchronous>, transform_indices = @transform_9, window_bounds = array<i64: 2, 32>}, {pipeline_mode = #tpu.pipeline_mode<synchronous>, transform_indices = @transform_10, window_bounds = array<i64: 2, 32>}]} {
    %c0 = arith.constant 0 : index
    %c0_0 = arith.constant 0 : index
    %0 = vector.load %arg2[%c0, %c0_0] : memref<8x36xbf16, #tpu.memory_space<vmem>>, vector<8x36xbf16>
    %c0_1 = arith.constant 0 : index
    %c0_2 = arith.constant 0 : index
    %1 = vector.load %arg3[%c0_1, %c0_2] : memref<8x1xf32, #tpu.memory_space<vmem>>, vector<8x1xf32>
    %c0_3 = arith.constant 0 : index
    %c0_4 = arith.constant 0 : index
    %c0_5 = arith.constant 0 : index
    %2 = vector.load %arg1[%c0_3, %c0_4, %c0_5] : memref<2x36x196xbf16, #tpu.memory_space<vmem>>, vector<1x36x196xbf16>
    %3 = vector.shape_cast %2 : vector<1x36x196xbf16> to vector<36x196xbf16>
    %cst = arith.constant dense<0.000000e+00> : vector<8x196xf32>
    %4 = tpu.matmul %0, %3, %cst {dimension_numbers = #tpu.dot_dimension_numbers<[1], [0], [0], [1], [0, 0, 1, 1], [], []>} : vector<8x36xbf16>, vector<36x196xbf16>, vector<8x196xf32> -> vector<8x196xf32>
    %5 = vector.broadcast %1 : vector<8x1xf32> to vector<8x196xf32>
    %6 = arith.addf %4, %5 : vector<8x196xf32>
    %cst_6 = arith.constant 0.000000e+00 : f32
    %7 = vector.broadcast %cst_6 : f32 to vector<8x196xf32>
    %8 = arith.maximumf %6, %7 : vector<8x196xf32>
    %9 = arith.truncf %8 : vector<8x196xf32> to vector<8x196xbf16>
    %c1 = arith.constant 1 : index
    %c0_7 = arith.constant 0 : index
    %c0_8 = arith.constant 0 : index
    %10 = vector.load %arg1[%c1, %c0_7, %c0_8] : memref<2x36x196xbf16, #tpu.memory_space<vmem>>, vector<1x36x196xbf16>
    %11 = vector.shape_cast %10 : vector<1x36x196xbf16> to vector<36x196xbf16>
    %cst_9 = arith.constant dense<0.000000e+00> : vector<8x196xf32>
    %12 = tpu.matmul %0, %11, %cst_9 {dimension_numbers = #tpu.dot_dimension_numbers<[1], [0], [0], [1], [0, 0, 1, 1], [], []>} : vector<8x36xbf16>, vector<36x196xbf16>, vector<8x196xf32> -> vector<8x196xf32>
    %13 = vector.broadcast %1 : vector<8x1xf32> to vector<8x196xf32>
    %14 = arith.addf %12, %13 : vector<8x196xf32>
    %cst_10 = arith.constant 0.000000e+00 : f32
    %15 = vector.broadcast %cst_10 : f32 to vector<8x196xf32>
    %16 = arith.maximumf %14, %15 : vector<8x196xf32>
    %17 = arith.truncf %16 : vector<8x196xf32> to vector<8x196xbf16>
    %c0_11 = arith.constant 0 : index
    %c0_12 = arith.constant 0 : index
    %c0_13 = arith.constant 0 : index
    %18 = vector.load %arg4[%c0_11, %c0_12, %c0_13] : memref<8x196x32xbf16, #tpu.memory_space<vmem>>, vector<1x196x32xbf16>
    %19 = vector.shape_cast %18 : vector<1x196x32xbf16> to vector<196x32xbf16>
    %20 = vector.extract_strided_slice %9 {offsets = [0, 0], sizes = [1, 196], strides = [1, 1]} : vector<8x196xbf16> to vector<1x196xbf16>
    %cst_14 = arith.constant dense<0.000000e+00> : vector<1x32xf32>
    %21 = tpu.matmul %20, %19, %cst_14 {dimension_numbers = #tpu.dot_dimension_numbers<[1], [0], [0], [1], [0, 0, 1, 1], [], []>} : vector<1x196xbf16>, vector<196x32xbf16>, vector<1x32xf32> -> vector<1x32xf32>
    %22 = vector.extract_strided_slice %17 {offsets = [0, 0], sizes = [1, 196], strides = [1, 1]} : vector<8x196xbf16> to vector<1x196xbf16>
    %cst_15 = arith.constant dense<0.000000e+00> : vector<1x32xf32>
    %23 = tpu.matmul %22, %19, %cst_15 {dimension_numbers = #tpu.dot_dimension_numbers<[1], [0], [0], [1], [0, 0, 1, 1], [], []>} : vector<1x196xbf16>, vector<196x32xbf16>, vector<1x32xf32> -> vector<1x32xf32>
    %c1_16 = arith.constant 1 : index
    %c0_17 = arith.constant 0 : index
    %c0_18 = arith.constant 0 : index
    %24 = vector.load %arg4[%c1_16, %c0_17, %c0_18] : memref<8x196x32xbf16, #tpu.memory_space<vmem>>, vector<1x196x32xbf16>
    %25 = vector.shape_cast %24 : vector<1x196x32xbf16> to vector<196x32xbf16>
    %26 = vector.extract_strided_slice %9 {offsets = [1, 0], sizes = [1, 196], strides = [1, 1]} : vector<8x196xbf16> to vector<1x196xbf16>
    %cst_19 = arith.constant dense<0.000000e+00> : vector<1x32xf32>
    %27 = tpu.matmul %26, %25, %cst_19 {dimension_numbers = #tpu.dot_dimension_numbers<[1], [0], [0], [1], [0, 0, 1, 1], [], []>} : vector<1x196xbf16>, vector<196x32xbf16>, vector<1x32xf32> -> vector<1x32xf32>
    %28 = arith.addf %21, %27 : vector<1x32xf32>
    %29 = vector.extract_strided_slice %17 {offsets = [1, 0], sizes = [1, 196], strides = [1, 1]} : vector<8x196xbf16> to vector<1x196xbf16>
    %cst_20 = arith.constant dense<0.000000e+00> : vector<1x32xf32>
    %30 = tpu.matmul %29, %25, %cst_20 {dimension_numbers = #tpu.dot_dimension_numbers<[1], [0], [0], [1], [0, 0, 1, 1], [], []>} : vector<1x196xbf16>, vector<196x32xbf16>, vector<1x32xf32> -> vector<1x32xf32>
    %31 = arith.addf %23, %30 : vector<1x32xf32>
    %c2 = arith.constant 2 : index
    %c0_21 = arith.constant 0 : index
    %c0_22 = arith.constant 0 : index
    %32 = vector.load %arg4[%c2, %c0_21, %c0_22] : memref<8x196x32xbf16, #tpu.memory_space<vmem>>, vector<1x196x32xbf16>
    %33 = vector.shape_cast %32 : vector<1x196x32xbf16> to vector<196x32xbf16>
    %34 = vector.extract_strided_slice %9 {offsets = [2, 0], sizes = [1, 196], strides = [1, 1]} : vector<8x196xbf16> to vector<1x196xbf16>
    %cst_23 = arith.constant dense<0.000000e+00> : vector<1x32xf32>
    %35 = tpu.matmul %34, %33, %cst_23 {dimension_numbers = #tpu.dot_dimension_numbers<[1], [0], [0], [1], [0, 0, 1, 1], [], []>} : vector<1x196xbf16>, vector<196x32xbf16>, vector<1x32xf32> -> vector<1x32xf32>
    %36 = arith.addf %28, %35 : vector<1x32xf32>
    %37 = vector.extract_strided_slice %17 {offsets = [2, 0], sizes = [1, 196], strides = [1, 1]} : vector<8x196xbf16> to vector<1x196xbf16>
    %cst_24 = arith.constant dense<0.000000e+00> : vector<1x32xf32>
    %38 = tpu.matmul %37, %33, %cst_24 {dimension_numbers = #tpu.dot_dimension_numbers<[1], [0], [0], [1], [0, 0, 1, 1], [], []>} : vector<1x196xbf16>, vector<196x32xbf16>, vector<1x32xf32> -> vector<1x32xf32>
    %39 = arith.addf %31, %38 : vector<1x32xf32>
    %c3 = arith.constant 3 : index
    %c0_25 = arith.constant 0 : index
    %c0_26 = arith.constant 0 : index
    %40 = vector.load %arg4[%c3, %c0_25, %c0_26] : memref<8x196x32xbf16, #tpu.memory_space<vmem>>, vector<1x196x32xbf16>
    %41 = vector.shape_cast %40 : vector<1x196x32xbf16> to vector<196x32xbf16>
    %42 = vector.extract_strided_slice %9 {offsets = [3, 0], sizes = [1, 196], strides = [1, 1]} : vector<8x196xbf16> to vector<1x196xbf16>
    %cst_27 = arith.constant dense<0.000000e+00> : vector<1x32xf32>
    %43 = tpu.matmul %42, %41, %cst_27 {dimension_numbers = #tpu.dot_dimension_numbers<[1], [0], [0], [1], [0, 0, 1, 1], [], []>} : vector<1x196xbf16>, vector<196x32xbf16>, vector<1x32xf32> -> vector<1x32xf32>
    %44 = arith.addf %36, %43 : vector<1x32xf32>
    %45 = vector.extract_strided_slice %17 {offsets = [3, 0], sizes = [1, 196], strides = [1, 1]} : vector<8x196xbf16> to vector<1x196xbf16>
    %cst_28 = arith.constant dense<0.000000e+00> : vector<1x32xf32>
    %46 = tpu.matmul %45, %41, %cst_28 {dimension_numbers = #tpu.dot_dimension_numbers<[1], [0], [0], [1], [0, 0, 1, 1], [], []>} : vector<1x196xbf16>, vector<196x32xbf16>, vector<1x32xf32> -> vector<1x32xf32>
    %47 = arith.addf %39, %46 : vector<1x32xf32>
    %c4 = arith.constant 4 : index
    %c0_29 = arith.constant 0 : index
    %c0_30 = arith.constant 0 : index
    %48 = vector.load %arg4[%c4, %c0_29, %c0_30] : memref<8x196x32xbf16, #tpu.memory_space<vmem>>, vector<1x196x32xbf16>
    %49 = vector.shape_cast %48 : vector<1x196x32xbf16> to vector<196x32xbf16>
    %50 = vector.extract_strided_slice %9 {offsets = [4, 0], sizes = [1, 196], strides = [1, 1]} : vector<8x196xbf16> to vector<1x196xbf16>
    %cst_31 = arith.constant dense<0.000000e+00> : vector<1x32xf32>
    %51 = tpu.matmul %50, %49, %cst_31 {dimension_numbers = #tpu.dot_dimension_numbers<[1], [0], [0], [1], [0, 0, 1, 1], [], []>} : vector<1x196xbf16>, vector<196x32xbf16>, vector<1x32xf32> -> vector<1x32xf32>
    %52 = arith.addf %44, %51 : vector<1x32xf32>
    %53 = vector.extract_strided_slice %17 {offsets = [4, 0], sizes = [1, 196], strides = [1, 1]} : vector<8x196xbf16> to vector<1x196xbf16>
    %cst_32 = arith.constant dense<0.000000e+00> : vector<1x32xf32>
    %54 = tpu.matmul %53, %49, %cst_32 {dimension_numbers = #tpu.dot_dimension_numbers<[1], [0], [0], [1], [0, 0, 1, 1], [], []>} : vector<1x196xbf16>, vector<196x32xbf16>, vector<1x32xf32> -> vector<1x32xf32>
    %55 = arith.addf %47, %54 : vector<1x32xf32>
    %c5 = arith.constant 5 : index
    %c0_33 = arith.constant 0 : index
    %c0_34 = arith.constant 0 : index
    %56 = vector.load %arg4[%c5, %c0_33, %c0_34] : memref<8x196x32xbf16, #tpu.memory_space<vmem>>, vector<1x196x32xbf16>
    %57 = vector.shape_cast %56 : vector<1x196x32xbf16> to vector<196x32xbf16>
    %58 = vector.extract_strided_slice %9 {offsets = [5, 0], sizes = [1, 196], strides = [1, 1]} : vector<8x196xbf16> to vector<1x196xbf16>
    %cst_35 = arith.constant dense<0.000000e+00> : vector<1x32xf32>
    %59 = tpu.matmul %58, %57, %cst_35 {dimension_numbers = #tpu.dot_dimension_numbers<[1], [0], [0], [1], [0, 0, 1, 1], [], []>} : vector<1x196xbf16>, vector<196x32xbf16>, vector<1x32xf32> -> vector<1x32xf32>
    %60 = arith.addf %52, %59 : vector<1x32xf32>
    %61 = vector.extract_strided_slice %17 {offsets = [5, 0], sizes = [1, 196], strides = [1, 1]} : vector<8x196xbf16> to vector<1x196xbf16>
    %cst_36 = arith.constant dense<0.000000e+00> : vector<1x32xf32>
    %62 = tpu.matmul %61, %57, %cst_36 {dimension_numbers = #tpu.dot_dimension_numbers<[1], [0], [0], [1], [0, 0, 1, 1], [], []>} : vector<1x196xbf16>, vector<196x32xbf16>, vector<1x32xf32> -> vector<1x32xf32>
    %63 = arith.addf %55, %62 : vector<1x32xf32>
    %c6 = arith.constant 6 : index
    %c0_37 = arith.constant 0 : index
    %c0_38 = arith.constant 0 : index
    %64 = vector.load %arg4[%c6, %c0_37, %c0_38] : memref<8x196x32xbf16, #tpu.memory_space<vmem>>, vector<1x196x32xbf16>
    %65 = vector.shape_cast %64 : vector<1x196x32xbf16> to vector<196x32xbf16>
    %66 = vector.extract_strided_slice %9 {offsets = [6, 0], sizes = [1, 196], strides = [1, 1]} : vector<8x196xbf16> to vector<1x196xbf16>
    %cst_39 = arith.constant dense<0.000000e+00> : vector<1x32xf32>
    %67 = tpu.matmul %66, %65, %cst_39 {dimension_numbers = #tpu.dot_dimension_numbers<[1], [0], [0], [1], [0, 0, 1, 1], [], []>} : vector<1x196xbf16>, vector<196x32xbf16>, vector<1x32xf32> -> vector<1x32xf32>
    %68 = arith.addf %60, %67 : vector<1x32xf32>
    %69 = vector.extract_strided_slice %17 {offsets = [6, 0], sizes = [1, 196], strides = [1, 1]} : vector<8x196xbf16> to vector<1x196xbf16>
    %cst_40 = arith.constant dense<0.000000e+00> : vector<1x32xf32>
    %70 = tpu.matmul %69, %65, %cst_40 {dimension_numbers = #tpu.dot_dimension_numbers<[1], [0], [0], [1], [0, 0, 1, 1], [], []>} : vector<1x196xbf16>, vector<196x32xbf16>, vector<1x32xf32> -> vector<1x32xf32>
    %71 = arith.addf %63, %70 : vector<1x32xf32>
    %c7 = arith.constant 7 : index
    %c0_41 = arith.constant 0 : index
    %c0_42 = arith.constant 0 : index
    %72 = vector.load %arg4[%c7, %c0_41, %c0_42] : memref<8x196x32xbf16, #tpu.memory_space<vmem>>, vector<1x196x32xbf16>
    %73 = vector.shape_cast %72 : vector<1x196x32xbf16> to vector<196x32xbf16>
    %74 = vector.extract_strided_slice %9 {offsets = [7, 0], sizes = [1, 196], strides = [1, 1]} : vector<8x196xbf16> to vector<1x196xbf16>
    %cst_43 = arith.constant dense<0.000000e+00> : vector<1x32xf32>
    %75 = tpu.matmul %74, %73, %cst_43 {dimension_numbers = #tpu.dot_dimension_numbers<[1], [0], [0], [1], [0, 0, 1, 1], [], []>} : vector<1x196xbf16>, vector<196x32xbf16>, vector<1x32xf32> -> vector<1x32xf32>
    %76 = arith.addf %68, %75 : vector<1x32xf32>
    %77 = vector.extract_strided_slice %17 {offsets = [7, 0], sizes = [1, 196], strides = [1, 1]} : vector<8x196xbf16> to vector<1x196xbf16>
    %cst_44 = arith.constant dense<0.000000e+00> : vector<1x32xf32>
    %78 = tpu.matmul %77, %73, %cst_44 {dimension_numbers = #tpu.dot_dimension_numbers<[1], [0], [0], [1], [0, 0, 1, 1], [], []>} : vector<1x196xbf16>, vector<196x32xbf16>, vector<1x32xf32> -> vector<1x32xf32>
    %79 = arith.addf %71, %78 : vector<1x32xf32>
    %80 = tpu.concatenate %76, %79 in 0 : vector<1x32xf32>, vector<1x32xf32> -> vector<2x32xf32>
    %c0_45 = arith.constant 0 : index
    %c0_46 = arith.constant 0 : index
    %81 = vector.load %arg5[%c0_45, %c0_46] : memref<1x32xf32, #tpu.memory_space<vmem>>, vector<1x32xf32>
    %82 = vector.broadcast %81 : vector<1x32xf32> to vector<2x32xf32>
    %83 = arith.addf %80, %82 : vector<2x32xf32>
    %cst_47 = arith.constant 0.000000e+00 : f32
    %84 = vector.broadcast %cst_47 : f32 to vector<2x32xf32>
    %85 = arith.maximumf %83, %84 : vector<2x32xf32>
    %c0_48 = arith.constant 0 : index
    %c0_49 = arith.constant 0 : index
    %86 = vector.load %arg10[%c0_48, %c0_49] : memref<2x32xf32, #tpu.memory_space<vmem>>, vector<2x32xf32>
    tpu.vector_store %arg10[%c0_48, %c0_49], %85 {strides = array<i32>} : memref<2x32xf32, #tpu.memory_space<vmem>>, vector<2x32xf32>,
    %c0_50 = arith.constant 0 : index
    %c0_51 = arith.constant 0 : index
    %87 = vector.load %arg6[%c0_50, %c0_51] : memref<2x6xf32, #tpu.memory_space<vmem>>, vector<2x6xf32>
    %88 = tpu.concatenate %85, %87 in 1 : vector<2x32xf32>, vector<2x6xf32> -> vector<2x38xf32>
    %89 = arith.truncf %88 : vector<2x38xf32> to vector<2x38xbf16>
    %c0_52 = arith.constant 0 : index
    %c0_53 = arith.constant 0 : index
    %90 = vector.load %arg7[%c0_52, %c0_53] : memref<38x33xbf16, #tpu.memory_space<vmem>>, vector<38x33xbf16>
    %cst_54 = arith.constant dense<0.000000e+00> : vector<2x33xf32>
    %91 = tpu.matmul %89, %90, %cst_54 {dimension_numbers = #tpu.dot_dimension_numbers<[1], [0], [0], [1], [0, 0, 1, 1], [], []>} : vector<2x38xbf16>, vector<38x33xbf16>, vector<2x33xf32> -> vector<2x33xf32>
    %c0_55 = arith.constant 0 : index
    %c0_56 = arith.constant 0 : index
    %92 = vector.load %arg8[%c0_55, %c0_56] : memref<1x33xf32, #tpu.memory_space<vmem>>, vector<1x33xf32>
    %93 = vector.broadcast %92 : vector<1x33xf32> to vector<2x33xf32>
    %94 = arith.addf %91, %93 : vector<2x33xf32>
    %95 = vector.extract_strided_slice %94 {offsets = [0, 0], sizes = [2, 1], strides = [1, 1]} : vector<2x33xf32> to vector<2x1xf32>
    %c0_57 = arith.constant 0 : index
    %c0_58 = arith.constant 0 : index
    %96 = vector.load %arg9[%c0_57, %c0_58] : memref<2x1xf32, #tpu.memory_space<vmem>>, vector<2x1xf32>
    tpu.vector_store %arg9[%c0_57, %c0_58], %95 {strides = array<i32>} : memref<2x1xf32, #tpu.memory_space<vmem>>, vector<2x1xf32>,
    %97 = vector.extract_strided_slice %94 {offsets = [0, 1], sizes = [2, 32], strides = [1, 1]} : vector<2x33xf32> to vector<2x32xf32>
    %c0_59 = arith.constant 0 : index
    %c0_60 = arith.constant 0 : index
    %98 = vector.load %arg11[%c0_59, %c0_60] : memref<2x32xf32, #tpu.memory_space<vmem>>, vector<2x32xf32>
    tpu.vector_store %arg11[%c0_59, %c0_60], %97 {strides = array<i32>} : memref<2x32xf32, #tpu.memory_space<vmem>>, vector<2x32xf32>,
    return
  }
  func.func @transform_0(%arg0: i32) -> (i32, i32, i32) {
    %c0_i32 = arith.constant 0 : i32
    %c0_i32_0 = arith.constant 0 : i32
    %c0_i32_1 = arith.constant 0 : i32
    %c0_i32_2 = arith.constant 0 : i32
    return %c0_i32, %c0_i32_0, %c0_i32_1 : i32, i32, i32
  }
  func.func @transform_1(%arg0: i32) -> (i32, i32) {
    %c0_i32 = arith.constant 0 : i32
    %c0_i32_0 = arith.constant 0 : i32
    %c0_i32_1 = arith.constant 0 : i32
    return %c0_i32, %c0_i32_0 : i32, i32
  }
  func.func @transform_2(%arg0: i32) -> (i32, i32) {
    %c0_i32 = arith.constant 0 : i32
    %c0_i32_0 = arith.constant 0 : i32
    %c0_i32_1 = arith.constant 0 : i32
    return %c0_i32, %c0_i32_0 : i32, i32
  }
  func.func @transform_3(%arg0: i32) -> (i32, i32, i32) {
    %c0_i32 = arith.constant 0 : i32
    %c0_i32_0 = arith.constant 0 : i32
    %c0_i32_1 = arith.constant 0 : i32
    %c0_i32_2 = arith.constant 0 : i32
    return %c0_i32, %c0_i32_0, %c0_i32_1 : i32, i32, i32
  }
  func.func @transform_4(%arg0: i32) -> (i32, i32) {
    %c0_i32 = arith.constant 0 : i32
    %c0_i32_0 = arith.constant 0 : i32
    %c0_i32_1 = arith.constant 0 : i32
    return %c0_i32, %c0_i32_0 : i32, i32
  }
  func.func @transform_5(%arg0: i32) -> (i32, i32) {
    %c0_i32 = arith.constant 0 : i32
    %c0_i32_0 = arith.constant 0 : i32
    %c0_i32_1 = arith.constant 0 : i32
    return %c0_i32, %c0_i32_0 : i32, i32
  }
  func.func @transform_6(%arg0: i32) -> (i32, i32) {
    %c0_i32 = arith.constant 0 : i32
    %c0_i32_0 = arith.constant 0 : i32
    %c0_i32_1 = arith.constant 0 : i32
    return %c0_i32, %c0_i32_0 : i32, i32
  }
  func.func @transform_7(%arg0: i32) -> (i32, i32) {
    %c0_i32 = arith.constant 0 : i32
    %c0_i32_0 = arith.constant 0 : i32
    %c0_i32_1 = arith.constant 0 : i32
    return %c0_i32, %c0_i32_0 : i32, i32
  }
  func.func @transform_8(%arg0: i32) -> (i32, i32) {
    %c0_i32 = arith.constant 0 : i32
    %c0_i32_0 = arith.constant 0 : i32
    %c0_i32_1 = arith.constant 0 : i32
    return %c0_i32, %c0_i32_0 : i32, i32
  }
  func.func @transform_9(%arg0: i32) -> (i32, i32) {
    %c0_i32 = arith.constant 0 : i32
    %c0_i32_0 = arith.constant 0 : i32
    %c0_i32_1 = arith.constant 0 : i32
    return %c0_i32, %c0_i32_0 : i32, i32
  }
  func.func @transform_10(%arg0: i32) -> (i32, i32) {
    %c0_i32 = arith.constant 0 : i32
    %c0_i32_0 = arith.constant 0 : i32
    %c0_i32_1 = arith.constant 0 : i32
    return %c0_i32, %c0_i32_0 : i32, i32
  }
}

</mosaic_0001>

<bundles_post_ra>
// kernel: _apply_full.1
= control target key start
LH: loop header
LB: loop body
LE: loop exit
PB: predicated region body
PF: predicated region fallthrough
CT: control target
= control target key end

     0   :  { %16 = vsyncpa [#allocation3], 0  ;;  %v2503_v2 = vmov 0   ;;  %vm76_vm0 = vcmask 1041408   ;;  %vm72_vm1 = vcmask 293888   ;;  %s3251_s0 = inlined_call_operand.vmem [shape: bf16[2,36,196], index: 0, kind: input, shape index: {}]   ;;  %s3252_s1 = inlined_call_operand.vmem [shape: bf16[8,36], index: 1, kind: input, shape index: {}]   ;;  %s3253_s2 = inlined_call_operand.vmem [shape: f32[8,1], index: 2, kind: input, shape index: {}]   ;;  %s3254_s3 = inlined_call_operand.vmem [shape: bf16[8,196,32], index: 3, kind: input, shape index: {}]   ;;  %s3255_s4 = inlined_call_operand.vmem [shape: f32[1,32], index: 4, kind: input, shape index: {}]   ;;  %s3256_s5 = inlined_call_operand.vmem [shape: f32[2,6], index: 5, kind: input, shape index: {}]   ;;  %s3257_s6 = inlined_call_operand.vmem [shape: bf16[38,33], index: 6, kind: input, shape index: {}]   ;;  %s3258_s7 = inlined_call_operand.vmem [shape: f32[1,33], index: 7, kind: input, shape index: {}]   ;;  %s3259_s8 = inlined_call_operand.vmem [shape: f32[2,1], index: 8, kind: output, shape index: {0}]   ;;  %s3260_s9 = inlined_call_operand.hbm [shape: f32[2,32], index: 9, kind: output, shape index: {1}]   ;;  %s3261_s10 = inlined_call_operand.hbm [shape: f32[2,32], index: 10, kind: output, shape index: {2}]  }
   0x1   :  { %v2332_v0 = vld [vmem:[%s3251_s0 + $0x4] ss:$8 sps:$4 sm:$0xff]   ;;  %115 = vmatprep.mubr.bf16.mxu0 %v2503_v2  ;;  %197 = vmatprep.mubr.bf16.mxu1 %v2503_v2  ;;  %v2336_v3 = vld [vmem:[%s3251_s0] ss:$8 sps:$4 sm:$0xff]   ;;  %v2338_v5 = vld [vmem:[%s3251_s0 + $0x14] ss:$8 sps:$4 sm:$0xff]  }
   0x2   :  { %v2334_v1 = vld [vmem:[%s3251_s0 + $0x2c] ss:$8 sps:$4 sm:$0xff]   ;;  %83 = vmatprep.subr.bf16.mxu0 %v2332_v0  ;;  %v2337_v4 = vld [vmem:[%s3251_s0 + $0x28] ss:$8 sps:$4 sm:$0xff]   ;;  %2331 = vset.pattern.permute.xlu0 %v2503_v2  ;;  %v2340_v6 = vld [vmem:[%s3251_s0 + $0x3c] ss:$8 sps:$4 sm:$0xff]  }
   0x3   :  { %165 = vmatprep.subr.bf16.mxu1 %v2334_v1  ;;  %84 = vmatpush1.bf16.msra.mxu0 %v2336_v3  ;;  %v2342_v7 = vld [vmem:[%s3251_s0 + $0x10] ss:$8 sps:$4 sm:$0xff]   ;;  %v41_v9 = vld [vmem:[%s3251_s0 + $0x20] sm:$0x33]  ;;  %v1944_v10 = vld [vmem:[%s3251_s0 + $0x48] sm:$0x33] }
   0x4   :  { %166 = vmatpush1.bf16.msra.mxu1 %v2337_v4  ;;  %85 = vmatprep.subr.bf16.mxu0 %v2338_v5  ;;  %v2343_v8 = vld [vmem:[%s3251_s0 + $0x38] ss:$8 sps:$4 sm:$0xff]   ;;  %v1937_v11 = vcombine.high %v41_v9, %v41_v9  ;;  %v1950_v12 = vcombine.high %v1944_v10, %v1944_v10  ;;  %v1936_v13 = vcombine.low %v41_v9, %v41_v9  ;;  %v2348_v19 = vld [vmem:[%s3254_s3 + $0x64] sm:$0xff]   ;;  %v2349_v20 = vld [vmem:[%s3254_s3 + $0x6c] sm:$0xff]  }
   0x5   :  { %167 = vmatprep.subr.bf16.mxu1 %v2340_v6  ;;  %v1949_v14 = vcombine.low %v1944_v10, %v1944_v10  ;;  %v36_v15 = vld [vmem:[%s3253_s2] sm:$0xff]  ;;  %v2350_v21 = vld [vmem:[%s3254_s3 + $0x74] sm:$0xff]   ;;  %v2353_v24 = vld [vmem:[%s3254_s3 + $0x8c] sm:$0xff]  }
   0x6   :  { %44 = vperm.xlu0 %2331, %v36_v15   ;;  %v78_v16 = vsel %vm76_vm0, %v1936_v13, 0  ;;  %v35_v18 = vld [vmem:[%s3252_s1] sm:$0xf]  ;;  %v2352_v23 = vld [vmem:[%s3254_s3 + $0x84] sm:$0xff]   ;;  %v2354_v25 = vld [vmem:[%s3254_s3 + $0x94] sm:$0xff]  }
   0x7   :  { %86 = vmatpush1.bf16.msra.mxu0 %v2342_v7  ;;  %v160_v17 = vsel %vm76_vm0, %v1949_v14, 0  ;;  %v2351_v22 = vld [vmem:[%s3254_s3 + $0x7c] sm:$0xff]   ;;  %v2356_v27 = vld [vmem:[%s3254_s3 + $0xa4] sm:$0xff]   ;;  %v2357_v28 = vld [vmem:[%s3254_s3 + $0xac] sm:$0xff]  }
   0x8   :  { %168 = vmatpush1.bf16.msra.mxu1 %v2343_v8  ;;  %1938 = vmatprep.subr.msk.bf16.mxu0 %vm76_vm0, %v1937_v11  ;;  %v2355_v26 = vld [vmem:[%s3254_s3 + $0x9c] sm:$0xff]   ;;  %v2358_v29 = vld [vmem:[%s3254_s3 + $0xb4] sm:$0xff]  }
   0x9   :  { %1951 = vmatprep.subr.msk.bf16.mxu1 %vm76_vm0, %v1950_v12 }
   0xb   :  { %88 = vmatpush1.bf16.msra.mxu0 %v78_v16 }
   0xc   :  { %170 = vmatpush1.bf16.msra.mxu1 %v160_v17  ;;  %350 = vmatprep.subr.bf16.mxu0 %v2503_v2 }
   0xd   :  { %520 = vmatprep.subr.bf16.mxu1 %v2503_v2 }
   0xe   :  { %1939 = vmatmul.mubr.msk.bf16.vlgmr.msra.gmra.mrb[0].mxu0 %vm72_vm1, %v35_v18 }
   0xf   :  { %1952 = vmatmul.mubr.msk.bf16.vlgmr.msra.gmra.mrb[0].mxu1 %vm72_vm1, %v35_v18  ;;  %351 = vmatpush1.bf16.msra.mxu0 %v2348_v19 }
  0x10   :  { %521 = vmatpush1.bf16.msra.mxu1 %v2348_v19  ;;  %352 = vmatprep.subr.bf16.mxu0 %v2503_v2 }
  0x11   :  { %522 = vmatprep.subr.bf16.mxu1 %v2503_v2 }
  0x13   :  { %353 = vmatpush1.bf16.msra.mxu0 %v2349_v20 }
  0x14   :  { %523 = vmatpush1.bf16.msra.mxu1 %v2349_v20  ;;  %354 = vmatprep.subr.bf16.mxu0 %v2503_v2 }
  0x15   :  { %524 = vmatprep.subr.bf16.mxu1 %v2503_v2 }
  0x17   :  { %355 = vmatpush1.bf16.msra.mxu0 %v2350_v21 }
  0x18   :  { %525 = vmatpush1.bf16.msra.mxu1 %v2350_v21  ;;  %356 = vmatprep.subr.bf16.mxu0 %v2503_v2 }
  0x19   :  { %526 = vmatprep.subr.bf16.mxu1 %v2503_v2 }
  0x1b   :  { %357 = vmatpush1.bf16.msra.mxu0 %v2351_v22 }
  0x1c   :  { %527 = vmatpush1.bf16.msra.mxu1 %v2351_v22  ;;  %358 = vmatprep.subr.bf16.mxu0 %v2503_v2 }
  0x1d   :  { %528 = vmatprep.subr.bf16.mxu1 %v2503_v2 }
  0x1f   :  { %359 = vmatpush1.bf16.msra.mxu0 %v2352_v23 }
  0x20   :  { %529 = vmatpush1.bf16.msra.mxu1 %v2352_v23  ;;  %360 = vmatprep.subr.bf16.mxu0 %v2503_v2 }
  0x21   :  { %530 = vmatprep.subr.bf16.mxu1 %v2503_v2 }
  0x23   :  { %361 = vmatpush1.bf16.msra.mxu0 %v2353_v24 }
  0x24   :  { %531 = vmatpush1.bf16.msra.mxu1 %v2353_v24  ;;  %362 = vmatprep.subr.bf16.mxu0 %v2503_v2 }
  0x25   :  { %532 = vmatprep.subr.bf16.mxu1 %v2503_v2 }
  0x27   :  { %363 = vmatpush1.bf16.msra.mxu0 %v2354_v25 }
  0x28   :  { %533 = vmatpush1.bf16.msra.mxu1 %v2354_v25  ;;  %364 = vmatprep.subr.bf16.mxu0 %v2503_v2 }
  0x29   :  { %534 = vmatprep.subr.bf16.mxu1 %v2503_v2 }
  0x2b   :  { %365 = vmatpush1.bf16.msra.mxu0 %v2355_v26 }
  0x2c   :  { %535 = vmatpush1.bf16.msra.mxu1 %v2355_v26  ;;  %366 = vmatprep.subr.bf16.mxu0 %v2503_v2 }
  0x2d   :  { %536 = vmatprep.subr.bf16.mxu1 %v2503_v2 }
  0x2f   :  { %367 = vmatpush1.bf16.msra.mxu0 %v2356_v27 }
  0x30   :  { %537 = vmatpush1.bf16.msra.mxu1 %v2356_v27  ;;  %368 = vmatprep.subr.bf16.mxu0 %v2503_v2 }
  0x31   :  { %538 = vmatprep.subr.bf16.mxu1 %v2503_v2 }
  0x33   :  { %369 = vmatpush1.bf16.msra.mxu0 %v2357_v28 }
  0x34   :  { %539 = vmatpush1.bf16.msra.mxu1 %v2357_v28  ;;  %370 = vmatprep.subr.bf16.mxu0 %v2503_v2 }
  0x35   :  { %540 = vmatprep.subr.bf16.mxu1 %v2503_v2 }
  0x37   :  { %371 = vmatpush1.bf16.msra.mxu0 %v2358_v29 }
  0x38   :  { %541 = vmatpush1.bf16.msra.mxu1 %v2358_v29  ;;  %372 = vmatprep.subr.bf16.mxu0 %v2503_v2 }
  0x39   :  { %542 = vmatprep.subr.bf16.mxu1 %v2503_v2 }
  0x3a   :  { %17 = vsyncpa [#allocation5], 0  ;;  %v2359_v30 = vld [vmem:[%s3254_s3 + $0xbc] sm:$0xff]   ;;  %v2360_v31 = vld [vmem:[%s3254_s3 + $0xc4] ss:$0 sps:$4 sm:$0x33]  }
  0x3b   :  { %373 = vmatpush1.bf16.msra.mxu0 %v2359_v30  ;;  %v348_v32 = vsel %vm76_vm0, %v2360_v31, 0  ;;  %vm343_vm2 = vcmask 556032   ;;  %v2361_v57 = vld [vmem:[%s3254_s3] sm:$0xff]   ;;  %v2362_v59 = vld [vmem:[%s3254_s3 + $0x8] sm:$0xff]   ;;  %v2363_v60 = vld [vmem:[%s3254_s3 + $0x10] sm:$0xff]   ;;  %s2504_s26 = smov 32  }
  0x3c   :  { %543 = vmatpush1.bf16.msra.mxu1 %v2359_v30  ;;  %374 = vmatprep.subr.bf16.mxu0 %v2503_v2  ;;  %v2364_v61 = vld [vmem:[%s3254_s3 + $0x18] sm:$0xff]   ;;  %v2365_v62 = vld [vmem:[%s3254_s3 + $0x20] sm:$0xff]   ;;  %v2366_v63 = vld [vmem:[%s3254_s3 + $0x28] sm:$0xff]   ;;  %vm1849_vm3 = vcmask 1042432   ;;  %vm2506_vm4 = vmmov 0   ;;  %vm1797_vm5 = vcmask 1040384  }
  0x3d   :  { %544 = vmatprep.subr.bf16.mxu1 %v2503_v2  ;;  %v2367_v0 = vld [vmem:[%s3254_s3 + $0x30] sm:$0xff]   ;;  %v2368_v1 = vld [vmem:[%s3254_s3 + $0x38] sm:$0xff]   ;;  %v2369_v3 = vld [vmem:[%s3254_s3 + $0x40] sm:$0xff]   ;;  %vm1815_vm6 = vcmask 261120   ;;  %vm1808_vm7 = vcmask 254976   ;;  %vm1845_vm8 = vcmask 310272  }
  0x3e   :  { %v2370_v4 = vld [vmem:[%s3254_s3 + $0x48] sm:$0xff]   ;;  %v2371_v5 = vld [vmem:[%s3254_s3 + $0x50] sm:$0xff]   ;;  %v2372_v6 = vld [vmem:[%s3254_s3 + $0x58] sm:$0xff]  }
  0x3f   :  { %375 = vmatpush1.bf16.msra.mxu0 %v348_v32  ;;  %v2373_v7 = vld [vmem:[%s3254_s3 + $0x60] ss:$0 sps:$4 sm:$0x33]   ;;  %v2374_v9 = vld [vmem:[%s3254_s3 + $0xc8] sm:$0xff]   ;;  %v2375_v12 = vld [vmem:[%s3254_s3 + $0xd0] sm:$0xff]  }
  0x40   :  { %545 = vmatpush1.bf16.msra.mxu1 %v348_v32  ;;  %470 = vmatprep.subr.bf16.mxu0 %v2503_v2  ;;  %v468_v8 = vsel %vm76_vm0, %v2373_v7, 0  ;;  %v2376_v13 = vld [vmem:[%s3254_s3 + $0xd8] sm:$0xff]   ;;  %v2377_v14 = vld [vmem:[%s3254_s3 + $0xe0] sm:$0xff]   ;;  %v2378_v15 = vld [vmem:[%s3254_s3 + $0xe8] sm:$0xff]  }
  0x41   :  { %562 = vmatprep.subr.bf16.mxu1 %v2503_v2  ;;  %v2379_v16 = vld [vmem:[%s3254_s3 + $0xf0] sm:$0xff]   ;;  %v2380_v17 = vld [vmem:[%s3254_s3 + $0xf8] sm:$0xff]   ;;  %v2381_v18 = vld [vmem:[%s3254_s3 + $0x100] sm:$0xff]  }
  0x42   :  { %v2382_v19 = vld [vmem:[%s3254_s3 + $0x108] sm:$0xff]   ;;  %v2383_v20 = vld [vmem:[%s3254_s3 + $0x110] sm:$0xff]   ;;  %v2384_v21 = vld [vmem:[%s3254_s3 + $0x118] sm:$0xff]  }
  0x43   :  { %v2385_v22 = vld [vmem:[%s3254_s3 + $0x120] sm:$0xff]   ;;  %v2386_v23 = vld [vmem:[%s3254_s3 + $0x128] ss:$0 sps:$4 sm:$0x33]   ;;  %v2387_v25 = vld [vmem:[%s3254_s3 + $0x12c] sm:$0xff]  }
  0x44   :  { %v712_v24 = vsel %vm76_vm0, %v2386_v23, 0  ;;  %v2388_v30 = vld [vmem:[%s3254_s3 + $0x134] sm:$0xff]   ;;  %v2389_v31 = vld [vmem:[%s3254_s3 + $0x13c] sm:$0xff]   ;;  %v2390_v32 = vld [vmem:[%s3254_s3 + $0x144] sm:$0xff]  }
  0x45   :  { %v2425_v23 = vld [vmem:[%s3254_s3 + $0x254] ss:$0 sps:$4 sm:$0x33]  }
  0x85   :  { %v45_v33 = vpop.permute.xlu0 %44 }
  0xe1   :  { %v117_v34 = vpop.f32.mrb[0].mxu0 }
  0xe2   :  { %v199_v35 = vpop.f32.mrb[0].mxu1  ;;  %v118_v36 = vadd.f32 %v117_v34, %v45_v33  ;;  %v119_v38 = vpop.f32.mrb[1].mxu0  ;;  %v2392_v34 = vld [vmem:[%s3254_s3 + $0x154] sm:$0xff]  }
  0xe3   :  { %v200_v37 = vadd.f32 %v199_v35, %v45_v33  ;;  %v201_v39 = vpop.f32.mrb[1].mxu1  ;;  %v120_v40 = vadd.f32 %v119_v38, %v45_v33  ;;  %v121_v42 = vpop.f32.mrb[2].mxu0  ;;  %v2393_v35 = vld [vmem:[%s3254_s3 + $0x15c] sm:$0xff]   ;;  %v2396_v38 = vld [vmem:[%s3254_s3 + $0x174] sm:$0xff]  }
  0xe4   :  { %v202_v41 = vadd.f32 %v201_v39, %v45_v33  ;;  %v203_v43 = vpop.f32.mrb[2].mxu1  ;;  %v124_v44 = vmax.f32 %v118_v36, 0.0  ;;  %v122_v46 = vpop.f32.mrb[3].mxu0  ;;  %v2391_v33 = vld [vmem:[%s3254_s3 + $0x14c] sm:$0xff]   ;;  %v2394_v36 = vld [vmem:[%s3254_s3 + $0x164] sm:$0xff]   ;;  %v2397_v39 = vld [vmem:[%s3254_s3 + $0x17c] sm:$0xff]  }
  0xe5   :  { %v206_v45 = vmax.f32 %v200_v37, 0.0  ;;  %v204_v47 = vpop.f32.mrb[3].mxu1  ;;  %v125_v48 = vmax.f32 %v120_v40, 0.0  ;;  %v2395_v37 = vld [vmem:[%s3254_s3 + $0x16c] sm:$0xff]   ;;  %v2398_v40 = vld [vmem:[%s3254_s3 + $0x184] sm:$0xff]  }
  0xe6   :  { %v207_v49 = vmax.f32 %v202_v41, 0.0  ;;  %v2676_v50 = vpack.c.bf16 %v124_v44, %v124_v44  ;;  %v2399_v41 = vld [vmem:[%s3254_s3 + $0x18c] ss:$0 sps:$4 sm:$0x33]   ;;  %v2400_v43 = vld [vmem:[%s3254_s3 + $0x190] sm:$0xff]  }
  0xe7   :  { %v2678_v51 = vpack.c.bf16 %v206_v45, %v206_v45  ;;  %v2680_v52 = vpack.c.bf16 %v125_v48, %v125_v48  ;;  %v912_v42 = vsel %vm76_vm0, %v2399_v41, 0  ;;  %v2401_v48 = vld [vmem:[%s3254_s3 + $0x198] sm:$0xff]  }
  0xe8   :  { %v2682_v53 = vpack.c.bf16 %v207_v49, %v207_v49  ;;  %v2685_v54 = vshrl.u32 %v2676_v50, 16  ;;  %v630_v26 = vrot.slane %v2676_v50, 1  ;;  %v2402_v49 = vld [vmem:[%s3254_s3 + $0x1a0] sm:$0xff]   ;;  %v1028_v7 = vrot.slane %v2676_v50, 2 }
  0xe9   :  { %v2688_v55 = vshrl.u32 %v2680_v52, 16  ;;  %v2697_v58 = vshrl.u32 %v2678_v51, 16  ;;  %v631_v10 = vrot.slane %v2680_v52, 1  ;;  %v757_v27 = vrot.slane %v2678_v51, 1  ;;  %v2439_v41 = vld [vmem:[%s3254_s3 + $0x2bc] sm:$0xff]  }
  0xea   :  { %v2691_v56 = vshrl.u32 %v2682_v53, 16  ;;  %v758_v11 = vrot.slane %v2682_v53, 1  ;;  %v830_v44 = vrot.slane %v2685_v54, 1  ;;  %v1029_v46 = vrot.slane %v2680_v52, 2 }
  0xeb   :  { %1991 = vmatprep.mubr.msk.bf16.mxu0 %vm343_vm2, %v2688_v55  ;;  %v831_v28 = vrot.slane %v2688_v55, 1  ;;  %v955_v45 = vrot.slane %v2697_v58, 1  ;;  %v1154_v47 = vrot.slane %v2682_v53, 2 }
  0xec   :  { %2006 = vmatprep.mubr.msk.bf16.mxu1 %vm343_vm2, %v2691_v56  ;;  %383 = vmatmul.mubr.bf16.vlgmr.msra.gmra.mrb[4].mxu0 %v2685_v54  ;;  %v956_v29 = vrot.slane %v2691_v56, 1 }
  0xed   :  { %553 = vmatmul.mubr.bf16.vlgmr.msra.gmra.mrb[4].mxu1 %v2697_v58  ;;  %471 = vmatpush1.bf16.msra.mxu0 %v2361_v57 }
  0xee   :  { %563 = vmatpush1.bf16.msra.mxu1 %v2361_v57  ;;  %2005 = vmatprep.mubr.msk.bf16.mxu0 %vm343_vm2, %v2680_v52  ;;  %v2403_v57 = vld [vmem:[%s3254_s3 + $0x1a8] sm:$0xff]  }
  0xef   :  { %2007 = vmatprep.mubr.msk.bf16.mxu1 %vm343_vm2, %v2682_v53  ;;  %472 = vmatprep.subr.bf16.mxu0 %v2503_v2 }
  0xf0   :  { %564 = vmatprep.subr.bf16.mxu1 %v2503_v2 }
  0xf1   :  { %473 = vmatpush1.bf16.msra.mxu0 %v2362_v59 }
  0xf2   :  { %565 = vmatpush1.bf16.msra.mxu1 %v2362_v59  ;;  %474 = vmatprep.subr.bf16.mxu0 %v2503_v2  ;;  %v2404_v59 = vld [vmem:[%s3254_s3 + $0x1b0] sm:$0xff]  }
  0xf3   :  { %566 = vmatprep.subr.bf16.mxu1 %v2503_v2 }
  0xf5   :  { %475 = vmatpush1.bf16.msra.mxu0 %v2363_v60 }
  0xf6   :  { %567 = vmatpush1.bf16.msra.mxu1 %v2363_v60  ;;  %476 = vmatprep.subr.bf16.mxu0 %v2503_v2  ;;  %v2405_v60 = vld [vmem:[%s3254_s3 + $0x1b8] sm:$0xff]  }
  0xf7   :  { %568 = vmatprep.subr.bf16.mxu1 %v2503_v2 }
  0xf9   :  { %477 = vmatpush1.bf16.msra.mxu0 %v2364_v61 }
  0xfa   :  { %569 = vmatpush1.bf16.msra.mxu1 %v2364_v61  ;;  %478 = vmatprep.subr.bf16.mxu0 %v2503_v2  ;;  %v2406_v61 = vld [vmem:[%s3254_s3 + $0x1c0] sm:$0xff]  }
  0xfb   :  { %570 = vmatprep.subr.bf16.mxu1 %v2503_v2 }
  0xfd   :  { %479 = vmatpush1.bf16.msra.mxu0 %v2365_v62 }
  0xfe   :  { %571 = vmatpush1.bf16.msra.mxu1 %v2365_v62  ;;  %480 = vmatprep.subr.bf16.mxu0 %v2503_v2  ;;  %v2407_v62 = vld [vmem:[%s3254_s3 + $0x1c8] sm:$0xff]  }
  0xff   :  { %572 = vmatprep.subr.bf16.mxu1 %v2503_v2 }
 0x101   :  { %481 = vmatpush1.bf16.msra.mxu0 %v2366_v63 }
 0x102   :  { %573 = vmatpush1.bf16.msra.mxu1 %v2366_v63  ;;  %482 = vmatprep.subr.bf16.mxu0 %v2503_v2  ;;  %v2408_v63 = vld [vmem:[%s3254_s3 + $0x1d0] sm:$0xff]  }
 0x103   :  { %574 = vmatprep.subr.bf16.mxu1 %v2503_v2 }
 0x105   :  { %483 = vmatpush1.bf16.msra.mxu0 %v2367_v0 }
 0x106   :  { %575 = vmatpush1.bf16.msra.mxu1 %v2367_v0  ;;  %484 = vmatprep.subr.bf16.mxu0 %v2503_v2  ;;  %v2409_v0 = vld [vmem:[%s3254_s3 + $0x1d8] sm:$0xff]  }
 0x107   :  { %576 = vmatprep.subr.bf16.mxu1 %v2503_v2 }
 0x109   :  { %485 = vmatpush1.bf16.msra.mxu0 %v2368_v1 }
 0x10a   :  { %577 = vmatpush1.bf16.msra.mxu1 %v2368_v1  ;;  %486 = vmatprep.subr.bf16.mxu0 %v2503_v2  ;;  %v2410_v1 = vld [vmem:[%s3254_s3 + $0x1e0] sm:$0xff]  }
 0x10b   :  { %578 = vmatprep.subr.bf16.mxu1 %v2503_v2 }
 0x10d   :  { %487 = vmatpush1.bf16.msra.mxu0 %v2369_v3 }
 0x10e   :  { %579 = vmatpush1.bf16.msra.mxu1 %v2369_v3  ;;  %488 = vmatprep.subr.bf16.mxu0 %v2503_v2  ;;  %v2411_v3 = vld [vmem:[%s3254_s3 + $0x1e8] sm:$0xff]  }
 0x10f   :  { %580 = vmatprep.subr.bf16.mxu1 %v2503_v2 }
 0x111   :  { %489 = vmatpush1.bf16.msra.mxu0 %v2370_v4 }
 0x112   :  { %581 = vmatpush1.bf16.msra.mxu1 %v2370_v4  ;;  %490 = vmatprep.subr.bf16.mxu0 %v2503_v2  ;;  %v2412_v4 = vld [vmem:[%s3254_s3 + $0x1f0] ss:$0 sps:$4 sm:$0x33]  }
 0x113   :  { %582 = vmatprep.subr.bf16.mxu1 %v2503_v2 }
 0x115   :  { %491 = vmatpush1.bf16.msra.mxu0 %v2371_v5 }
 0x116   :  { %583 = vmatpush1.bf16.msra.mxu1 %v2371_v5  ;;  %492 = vmatprep.subr.bf16.mxu0 %v2503_v2  ;;  %v1110_v5 = vsel %vm76_vm0, %v2412_v4, 0 }
 0x117   :  { %584 = vmatprep.subr.bf16.mxu1 %v2503_v2 }
 0x119   :  { %493 = vmatpush1.bf16.msra.mxu0 %v2372_v6 }
 0x11a   :  { %585 = vmatpush1.bf16.msra.mxu1 %v2372_v6  ;;  %494 = vmatprep.subr.bf16.mxu0 %v2503_v2  ;;  %v2413_v6 = vld [vmem:[%s3254_s3 + $0x1f4] sm:$0xff]  }
 0x11b   :  { %586 = vmatprep.subr.bf16.mxu1 %v2503_v2 }
 0x11d   :  { %495 = vmatpush1.bf16.msra.mxu0 %v468_v8 }
 0x11e   :  { %587 = vmatpush1.bf16.msra.mxu1 %v468_v8  ;;  %714 = vmatprep.subr.bf16.mxu0 %v2503_v2  ;;  %v1153_v8 = vrot.slane %v2678_v51, 2 }
 0x11f   :  { %763 = vmatprep.subr.bf16.mxu1 %v2503_v2 }
 0x120   :  { %503 = vmatmul.mubr.bf16.vlgmr.msra.gmra.mrb[4].mxu0 %v2676_v50 }
 0x121   :  { %595 = vmatmul.mubr.bf16.vlgmr.msra.gmra.mrb[4].mxu1 %v2678_v51  ;;  %715 = vmatpush1.bf16.msra.mxu0 %v2374_v9 }
 0x122   :  { %2046 = vmatprep.mubr.msk.bf16.mxu0 %vm343_vm2, %v631_v10  ;;  %764 = vmatpush1.bf16.msra.mxu1 %v2374_v9  ;;  %v1227_v9 = vrot.slane %v2688_v55, 2  ;;  %v1352_v10 = vrot.slane %v2691_v56, 2 }
 0x123   :  { %2047 = vmatprep.mubr.msk.bf16.mxu1 %vm343_vm2, %v758_v11  ;;  %716 = vmatprep.subr.bf16.mxu0 %v2503_v2  ;;  %v2414_v11 = vld [vmem:[%s3254_s3 + $0x1fc] sm:$0xff]  }
 0x124   :  { %765 = vmatprep.subr.bf16.mxu1 %v2503_v2 }
 0x125   :  { %717 = vmatpush1.bf16.msra.mxu0 %v2375_v12 }
 0x126   :  { %766 = vmatpush1.bf16.msra.mxu1 %v2375_v12  ;;  %718 = vmatprep.subr.bf16.mxu0 %v2503_v2  ;;  %v2415_v12 = vld [vmem:[%s3254_s3 + $0x204] sm:$0xff]  }
 0x127   :  { %767 = vmatprep.subr.bf16.mxu1 %v2503_v2 }
 0x129   :  { %719 = vmatpush1.bf16.msra.mxu0 %v2376_v13 }
 0x12a   :  { %768 = vmatpush1.bf16.msra.mxu1 %v2376_v13  ;;  %720 = vmatprep.subr.bf16.mxu0 %v2503_v2  ;;  %v2416_v13 = vld [vmem:[%s3254_s3 + $0x20c] sm:$0xff]  }
 0x12b   :  { %769 = vmatprep.subr.bf16.mxu1 %v2503_v2 }
 0x12d   :  { %721 = vmatpush1.bf16.msra.mxu0 %v2377_v14 }
 0x12e   :  { %770 = vmatpush1.bf16.msra.mxu1 %v2377_v14  ;;  %722 = vmatprep.subr.bf16.mxu0 %v2503_v2  ;;  %v2417_v14 = vld [vmem:[%s3254_s3 + $0x214] sm:$0xff]  }
 0x12f   :  { %771 = vmatprep.subr.bf16.mxu1 %v2503_v2 }
 0x131   :  { %723 = vmatpush1.bf16.msra.mxu0 %v2378_v15 }
 0x132   :  { %772 = vmatpush1.bf16.msra.mxu1 %v2378_v15  ;;  %724 = vmatprep.subr.bf16.mxu0 %v2503_v2  ;;  %v2418_v15 = vld [vmem:[%s3254_s3 + $0x21c] sm:$0xff]  }
 0x133   :  { %773 = vmatprep.subr.bf16.mxu1 %v2503_v2 }
 0x135   :  { %725 = vmatpush1.bf16.msra.mxu0 %v2379_v16 }
 0x136   :  { %774 = vmatpush1.bf16.msra.mxu1 %v2379_v16  ;;  %726 = vmatprep.subr.bf16.mxu0 %v2503_v2  ;;  %v2419_v16 = vld [vmem:[%s3254_s3 + $0x224] sm:$0xff]  }
 0x137   :  { %775 = vmatprep.subr.bf16.mxu1 %v2503_v2 }
 0x139   :  { %727 = vmatpush1.bf16.msra.mxu0 %v2380_v17 }
 0x13a   :  { %776 = vmatpush1.bf16.msra.mxu1 %v2380_v17  ;;  %728 = vmatprep.subr.bf16.mxu0 %v2503_v2  ;;  %v2420_v17 = vld [vmem:[%s3254_s3 + $0x22c] sm:$0xff]  }
 0x13b   :  { %777 = vmatprep.subr.bf16.mxu1 %v2503_v2 }
 0x13d   :  { %729 = vmatpush1.bf16.msra.mxu0 %v2381_v18 }
 0x13e   :  { %778 = vmatpush1.bf16.msra.mxu1 %v2381_v18  ;;  %730 = vmatprep.subr.bf16.mxu0 %v2503_v2  ;;  %v2421_v18 = vld [vmem:[%s3254_s3 + $0x234] sm:$0xff]  }
 0x13f   :  { %779 = vmatprep.subr.bf16.mxu1 %v2503_v2 }
 0x141   :  { %731 = vmatpush1.bf16.msra.mxu0 %v2382_v19 }
 0x142   :  { %780 = vmatpush1.bf16.msra.mxu1 %v2382_v19  ;;  %732 = vmatprep.subr.bf16.mxu0 %v2503_v2  ;;  %v1810_v19 = vld [vmem:[%s3256_s5] sm:$0x3] }
 0x143   :  { %781 = vmatprep.subr.bf16.mxu1 %v2503_v2  ;;  %1812 = vrot.lane.b32.xlu0 %v1810_v19, %s2504_s26 }
 0x145   :  { %733 = vmatpush1.bf16.msra.mxu0 %v2383_v20 }
 0x146   :  { %782 = vmatpush1.bf16.msra.mxu1 %v2383_v20  ;;  %734 = vmatprep.subr.bf16.mxu0 %v2503_v2  ;;  %v2422_v20 = vld [vmem:[%s3254_s3 + $0x23c] sm:$0xff]  }
 0x147   :  { %783 = vmatprep.subr.bf16.mxu1 %v2503_v2 }
 0x149   :  { %735 = vmatpush1.bf16.msra.mxu0 %v2384_v21 }
 0x14a   :  { %784 = vmatpush1.bf16.msra.mxu1 %v2384_v21  ;;  %736 = vmatprep.subr.bf16.mxu0 %v2503_v2  ;;  %v2423_v21 = vld [vmem:[%s3254_s3 + $0x244] sm:$0xff]  }
 0x14b   :  { %785 = vmatprep.subr.bf16.mxu1 %v2503_v2 }
 0x14d   :  { %737 = vmatpush1.bf16.msra.mxu0 %v2385_v22 }
 0x14e   :  { %786 = vmatpush1.bf16.msra.mxu1 %v2385_v22  ;;  %738 = vmatprep.subr.bf16.mxu0 %v2503_v2  ;;  %v2424_v22 = vld [vmem:[%s3254_s3 + $0x24c] sm:$0xff]  }
 0x14f   :  { %787 = vmatprep.subr.bf16.mxu1 %v2503_v2 }
 0x151   :  { %739 = vmatpush1.bf16.msra.mxu0 %v712_v24 }
 0x152   :  { %788 = vmatpush1.bf16.msra.mxu1 %v712_v24  ;;  %914 = vmatprep.subr.bf16.mxu0 %v2503_v2  ;;  %v1308_v24 = vsel %vm76_vm0, %v2425_v23, 0 }
 0x153   :  { %961 = vmatprep.subr.bf16.mxu1 %v2503_v2 }
 0x154   :  { %747 = vmatmul.mubr.bf16.vlgmr.msra.gmra.mrb[4].mxu0 %v630_v26  ;;  %v1226_v26 = vrot.slane %v2685_v54, 2 }
 0x155   :  { %796 = vmatmul.mubr.bf16.vlgmr.msra.gmra.mrb[4].mxu1 %v757_v27  ;;  %915 = vmatpush1.bf16.msra.mxu0 %v2387_v25  ;;  %v1351_v27 = vrot.slane %v2697_v58, 2 }
 0x156   :  { %2086 = vmatprep.mubr.msk.bf16.mxu0 %vm343_vm2, %v831_v28  ;;  %962 = vmatpush1.bf16.msra.mxu1 %v2387_v25  ;;  %v2426_v25 = vld [vmem:[%s3254_s3 + $0x258] sm:$0xff]   ;;  %v1425_v28 = vrot.slane %v2680_v52, 3  ;;  %v2428_v52 = vld [vmem:[%s3254_s3 + $0x268] sm:$0xff]  }
 0x157   :  { %2087 = vmatprep.mubr.msk.bf16.mxu1 %vm343_vm2, %v956_v29  ;;  %916 = vmatprep.subr.bf16.mxu0 %v2503_v2  ;;  %v1550_v29 = vrot.slane %v2682_v53, 3  ;;  %v2429_v53 = vld [vmem:[%s3254_s3 + $0x270] sm:$0xff]  }
 0x158   :  { %963 = vmatprep.subr.bf16.mxu1 %v2503_v2 }
 0x159   :  { %917 = vmatpush1.bf16.msra.mxu0 %v2388_v30 }
 0x15a   :  { %964 = vmatpush1.bf16.msra.mxu1 %v2388_v30  ;;  %918 = vmatprep.subr.bf16.mxu0 %v2503_v2  ;;  %v2427_v30 = vld [vmem:[%s3254_s3 + $0x260] sm:$0xff]  }
 0x15b   :  { %965 = vmatprep.subr.bf16.mxu1 %v2503_v2 }
 0x15d   :  { %919 = vmatpush1.bf16.msra.mxu0 %v2389_v31 }
 0x15e   :  { %966 = vmatpush1.bf16.msra.mxu1 %v2389_v31  ;;  %920 = vmatprep.subr.bf16.mxu0 %v2503_v2  ;;  %v2430_v31 = vld [vmem:[%s3254_s3 + $0x278] sm:$0xff]  }
 0x15f   :  { %967 = vmatprep.subr.bf16.mxu1 %v2503_v2 }
 0x161   :  { %921 = vmatpush1.bf16.msra.mxu0 %v2390_v32 }
 0x162   :  { %968 = vmatpush1.bf16.msra.mxu1 %v2390_v32  ;;  %922 = vmatprep.subr.bf16.mxu0 %v2503_v2  ;;  %v2431_v32 = vld [vmem:[%s3254_s3 + $0x280] sm:$0xff]  }
 0x163   :  { %969 = vmatprep.subr.bf16.mxu1 %v2503_v2 }
 0x165   :  { %923 = vmatpush1.bf16.msra.mxu0 %v2391_v33 }
 0x166   :  { %970 = vmatpush1.bf16.msra.mxu1 %v2391_v33  ;;  %924 = vmatprep.subr.bf16.mxu0 %v2503_v2  ;;  %v2432_v33 = vld [vmem:[%s3254_s3 + $0x288] sm:$0xff]  }
 0x167   :  { %971 = vmatprep.subr.bf16.mxu1 %v2503_v2 }
 0x169   :  { %925 = vmatpush1.bf16.msra.mxu0 %v2392_v34 }
 0x16a   :  { %972 = vmatpush1.bf16.msra.mxu1 %v2392_v34  ;;  %926 = vmatprep.subr.bf16.mxu0 %v2503_v2  ;;  %v2433_v34 = vld [vmem:[%s3254_s3 + $0x290] sm:$0xff]  }
 0x16b   :  { %973 = vmatprep.subr.bf16.mxu1 %v2503_v2 }
 0x16d   :  { %927 = vmatpush1.bf16.msra.mxu0 %v2393_v35 }
 0x16e   :  { %974 = vmatpush1.bf16.msra.mxu1 %v2393_v35  ;;  %928 = vmatprep.subr.bf16.mxu0 %v2503_v2  ;;  %v2434_v35 = vld [vmem:[%s3254_s3 + $0x298] sm:$0xff]  }
 0x16f   :  { %975 = vmatprep.subr.bf16.mxu1 %v2503_v2 }
 0x171   :  { %929 = vmatpush1.bf16.msra.mxu0 %v2394_v36 }
 0x172   :  { %976 = vmatpush1.bf16.msra.mxu1 %v2394_v36  ;;  %930 = vmatprep.subr.bf16.mxu0 %v2503_v2  ;;  %v2435_v36 = vld [vmem:[%s3254_s3 + $0x2a0] sm:$0xff]  }
 0x173   :  { %977 = vmatprep.subr.bf16.mxu1 %v2503_v2 }
 0x175   :  { %931 = vmatpush1.bf16.msra.mxu0 %v2395_v37 }
 0x176   :  { %978 = vmatpush1.bf16.msra.mxu1 %v2395_v37  ;;  %932 = vmatprep.subr.bf16.mxu0 %v2503_v2  ;;  %v2436_v37 = vld [vmem:[%s3254_s3 + $0x2a8] sm:$0xff]  }
 0x177   :  { %979 = vmatprep.subr.bf16.mxu1 %v2503_v2 }
 0x179   :  { %933 = vmatpush1.bf16.msra.mxu0 %v2396_v38 }
 0x17a   :  { %980 = vmatpush1.bf16.msra.mxu1 %v2396_v38  ;;  %934 = vmatprep.subr.bf16.mxu0 %v2503_v2  ;;  %v2437_v38 = vld [vmem:[%s3254_s3 + $0x2b0] sm:$0xff]  }
 0x17b   :  { %981 = vmatprep.subr.bf16.mxu1 %v2503_v2 }
 0x17d   :  { %935 = vmatpush1.bf16.msra.mxu0 %v2397_v39 }
 0x17e   :  { %982 = vmatpush1.bf16.msra.mxu1 %v2397_v39  ;;  %936 = vmatprep.subr.bf16.mxu0 %v2503_v2  ;;  %v2438_v39 = vld [vmem:[%s3254_s3 + $0x2b8] ss:$0 sps:$4 sm:$0x33]  }
 0x17f   :  { %983 = vmatprep.subr.bf16.mxu1 %v2503_v2 }
 0x181   :  { %937 = vmatpush1.bf16.msra.mxu0 %v2398_v40 }
 0x182   :  { %984 = vmatpush1.bf16.msra.mxu1 %v2398_v40  ;;  %938 = vmatprep.subr.bf16.mxu0 %v2503_v2  ;;  %v1506_v40 = vsel %vm76_vm0, %v2438_v39, 0 }
 0x183   :  { %985 = vmatprep.subr.bf16.mxu1 %v2503_v2 }
 0x185   :  { %939 = vmatpush1.bf16.msra.mxu0 %v912_v42 }
 0x186   :  { %986 = vmatpush1.bf16.msra.mxu1 %v912_v42  ;;  %1112 = vmatprep.subr.bf16.mxu0 %v2503_v2  ;;  %v1424_v42 = vrot.slane %v2676_v50, 3  ;;  %v2441_v50 = vld [vmem:[%s3254_s3 + $0x2cc] sm:$0xff]  }
 0x187   :  { %1159 = vmatprep.subr.bf16.mxu1 %v2503_v2 }
 0x188   :  { %947 = vmatmul.mubr.bf16.vlgmr.msra.gmra.mrb[4].mxu0 %v830_v44  ;;  %v1623_v44 = vrot.slane %v2688_v55, 3  ;;  %v2443_v55 = vld [vmem:[%s3254_s3 + $0x2dc] sm:$0xff]  }
 0x189   :  { %994 = vmatmul.mubr.bf16.vlgmr.msra.gmra.mrb[4].mxu1 %v955_v45  ;;  %1113 = vmatpush1.bf16.msra.mxu0 %v2400_v43  ;;  %v1748_v45 = vrot.slane %v2691_v56, 3  ;;  %v2444_v56 = vld [vmem:[%s3254_s3 + $0x2e4] sm:$0xff]  }
 0x18a   :  { %2126 = vmatprep.mubr.msk.bf16.mxu0 %vm343_vm2, %v1029_v46  ;;  %1160 = vmatpush1.bf16.msra.mxu1 %v2400_v43  ;;  %v1549_v43 = vrot.slane %v2678_v51, 3  ;;  %v2440_v46 = vld [vmem:[%s3254_s3 + $0x2c4] sm:$0xff]   ;;  %v2442_v51 = vld [vmem:[%s3254_s3 + $0x2d4] sm:$0xff]  }
 0x18b   :  { %2127 = vmatprep.mubr.msk.bf16.mxu1 %vm343_vm2, %v1154_v47  ;;  %1114 = vmatprep.subr.bf16.mxu0 %v2503_v2  ;;  %v2445_v47 = vld [vmem:[%s3254_s3 + $0x2ec] sm:$0xff]  }
 0x18c   :  { %1161 = vmatprep.subr.bf16.mxu1 %v2503_v2 }
 0x18d   :  { %1115 = vmatpush1.bf16.msra.mxu0 %v2401_v48 }
 0x18e   :  { %1162 = vmatpush1.bf16.msra.mxu1 %v2401_v48  ;;  %1116 = vmatprep.subr.bf16.mxu0 %v2503_v2  ;;  %v2446_v48 = vld [vmem:[%s3254_s3 + $0x2f4] sm:$0xff]  }
 0x18f   :  { %1163 = vmatprep.subr.bf16.mxu1 %v2503_v2 }
 0x191   :  { %1117 = vmatpush1.bf16.msra.mxu0 %v2402_v49 }
 0x192   :  { %1164 = vmatpush1.bf16.msra.mxu1 %v2402_v49  ;;  %1118 = vmatprep.subr.bf16.mxu0 %v2503_v2  ;;  %v2447_v49 = vld [vmem:[%s3254_s3 + $0x2fc] sm:$0xff]  }
 0x193   :  { %1165 = vmatprep.subr.bf16.mxu1 %v2503_v2 }
 0x195   :  { %1119 = vmatpush1.bf16.msra.mxu0 %v2403_v57 }
 0x196   :  { %1166 = vmatpush1.bf16.msra.mxu1 %v2403_v57  ;;  %1120 = vmatprep.subr.bf16.mxu0 %v2503_v2  ;;  %v2448_v57 = vld [vmem:[%s3254_s3 + $0x304] sm:$0xff]  }
 0x197   :  { %1167 = vmatprep.subr.bf16.mxu1 %v2503_v2 }
 0x199   :  { %1121 = vmatpush1.bf16.msra.mxu0 %v2404_v59 }
 0x19a   :  { %1168 = vmatpush1.bf16.msra.mxu1 %v2404_v59  ;;  %1122 = vmatprep.subr.bf16.mxu0 %v2503_v2  ;;  %v2449_v59 = vld [vmem:[%s3254_s3 + $0x30c] sm:$0xff]  }
 0x19b   :  { %1169 = vmatprep.subr.bf16.mxu1 %v2503_v2 }
 0x19d   :  { %1123 = vmatpush1.bf16.msra.mxu0 %v2405_v60 }
 0x19e   :  { %1170 = vmatpush1.bf16.msra.mxu1 %v2405_v60  ;;  %1124 = vmatprep.subr.bf16.mxu0 %v2503_v2  ;;  %v2450_v60 = vld [vmem:[%s3254_s3 + $0x314] sm:$0xff]  }
 0x19f   :  { %1171 = vmatprep.subr.bf16.mxu1 %v2503_v2 }
 0x1a1   :  { %1125 = vmatpush1.bf16.msra.mxu0 %v2406_v61 }
 0x1a2   :  { %1172 = vmatpush1.bf16.msra.mxu1 %v2406_v61  ;;  %1126 = vmatprep.subr.bf16.mxu0 %v2503_v2  ;;  %v2451_v61 = vld [vmem:[%s3254_s3 + $0x31c] ss:$0 sps:$4 sm:$0x33]  }
 0x1a3   :  { %1173 = vmatprep.subr.bf16.mxu1 %v2503_v2 }
 0x1a5   :  { %1127 = vmatpush1.bf16.msra.mxu0 %v2407_v62 }
 0x1a6   :  { %1174 = vmatpush1.bf16.msra.mxu1 %v2407_v62  ;;  %1128 = vmatprep.subr.bf16.mxu0 %v2503_v2  ;;  %v1704_v62 = vsel %vm76_vm0, %v2451_v61, 0 }
 0x1a7   :  { %1175 = vmatprep.subr.bf16.mxu1 %v2503_v2 }
 0x1a9   :  { %1129 = vmatpush1.bf16.msra.mxu0 %v2408_v63 }
 0x1aa   :  { %1176 = vmatpush1.bf16.msra.mxu1 %v2408_v63  ;;  %1130 = vmatprep.subr.bf16.mxu0 %v2503_v2  ;;  %v1622_v63 = vrot.slane %v2685_v54, 3  ;;  %v2454_v54 = vld [vmem:[%s3257_s6 + $0x10] ss:$0 sps:$4 sm:$0x77]  }
 0x1ab   :  { %1177 = vmatprep.subr.bf16.mxu1 %v2503_v2 }
 0x1ad   :  { %1131 = vmatpush1.bf16.msra.mxu0 %v2409_v0 }
 0x1ae   :  { %1178 = vmatpush1.bf16.msra.mxu1 %v2409_v0  ;;  %1132 = vmatprep.subr.bf16.mxu0 %v2503_v2  ;;  %v2505_v0 = vmov 0.0  }
 0x1af   :  { %1179 = vmatprep.subr.bf16.mxu1 %v2503_v2 }
 0x1b1   :  { %1133 = vmatpush1.bf16.msra.mxu0 %v2410_v1 }
 0x1b2   :  { %1180 = vmatpush1.bf16.msra.mxu1 %v2410_v1  ;;  %1134 = vmatprep.subr.bf16.mxu0 %v2503_v2  ;;  %v1747_v1 = vrot.slane %v2697_v58, 3  ;;  %v1851_v58 = vsel %vm1849_vm3, %v2454_v54, 0 }
 0x1b3   :  { %1181 = vmatprep.subr.bf16.mxu1 %v2503_v2 }
 0x1b5   :  { %1135 = vmatpush1.bf16.msra.mxu0 %v2411_v3 }
 0x1b6   :  { %1182 = vmatpush1.bf16.msra.mxu1 %v2411_v3  ;;  %1136 = vmatprep.subr.bf16.mxu0 %v2503_v2  ;;  %v2452_v3 = vld [vmem:[%s3257_s6] sm:$0xff]  }
 0x1b7   :  { %1183 = vmatprep.subr.bf16.mxu1 %v2503_v2 }
 0x1b9   :  { %1137 = vmatpush1.bf16.msra.mxu0 %v1110_v5 }
 0x1ba   :  { %1184 = vmatpush1.bf16.msra.mxu1 %v1110_v5  ;;  %1310 = vmatprep.subr.bf16.mxu0 %v2503_v2 }
 0x1bb   :  { %1357 = vmatprep.subr.bf16.mxu1 %v2503_v2 }
 0x1bc   :  { %1145 = vmatmul.mubr.bf16.vlgmr.msra.gmra.mrb[4].mxu0 %v1028_v7 }
 0x1bd   :  { %1192 = vmatmul.mubr.bf16.vlgmr.msra.gmra.mrb[4].mxu1 %v1153_v8  ;;  %1311 = vmatpush1.bf16.msra.mxu0 %v2413_v6  ;;  %v2248_v8 = vld [vmem:[%s3255_s4] ss:$0 sm:$0xff] }
 0x1be   :  { %2166 = vmatprep.mubr.msk.bf16.mxu0 %vm343_vm2, %v1227_v9  ;;  %1358 = vmatpush1.bf16.msra.mxu1 %v2413_v6 }
 0x1bf   :  { %2167 = vmatprep.mubr.msk.bf16.mxu1 %vm343_vm2, %v1352_v10  ;;  %1312 = vmatprep.subr.bf16.mxu0 %v2503_v2 }
 0x1c0   :  { %1359 = vmatprep.subr.bf16.mxu1 %v2503_v2 }
 0x1c1   :  { %1313 = vmatpush1.bf16.msra.mxu0 %v2414_v11 }
 0x1c2   :  { %1360 = vmatpush1.bf16.msra.mxu1 %v2414_v11  ;;  %1314 = vmatprep.subr.bf16.mxu0 %v2503_v2 }
 0x1c3   :  { %1361 = vmatprep.subr.bf16.mxu1 %v2503_v2 }
 0x1c5   :  { %1315 = vmatpush1.bf16.msra.mxu0 %v2415_v12 }
 0x1c6   :  { %1362 = vmatpush1.bf16.msra.mxu1 %v2415_v12  ;;  %1316 = vmatprep.subr.bf16.mxu0 %v2503_v2 }
 0x1c7   :  { %1363 = vmatprep.subr.bf16.mxu1 %v2503_v2 }
 0x1c9   :  { %1317 = vmatpush1.bf16.msra.mxu0 %v2416_v13 }
 0x1ca   :  { %1364 = vmatpush1.bf16.msra.mxu1 %v2416_v13  ;;  %1318 = vmatprep.subr.bf16.mxu0 %v2503_v2 }
 0x1cb   :  { %1365 = vmatprep.subr.bf16.mxu1 %v2503_v2 }
 0x1cd   :  { %1319 = vmatpush1.bf16.msra.mxu0 %v2417_v14 }
 0x1ce   :  { %1366 = vmatpush1.bf16.msra.mxu1 %v2417_v14  ;;  %1320 = vmatprep.subr.bf16.mxu0 %v2503_v2 }
 0x1cf   :  { %1367 = vmatprep.subr.bf16.mxu1 %v2503_v2 }
 0x1d1   :  { %1321 = vmatpush1.bf16.msra.mxu0 %v2418_v15 }
 0x1d2   :  { %1368 = vmatpush1.bf16.msra.mxu1 %v2418_v15  ;;  %1322 = vmatprep.subr.bf16.mxu0 %v2503_v2 }
 0x1d3   :  { %1369 = vmatprep.subr.bf16.mxu1 %v2503_v2 }
 0x1d5   :  { %1323 = vmatpush1.bf16.msra.mxu0 %v2419_v16 }
 0x1d6   :  { %1370 = vmatpush1.bf16.msra.mxu1 %v2419_v16  ;;  %1324 = vmatprep.subr.bf16.mxu0 %v2503_v2  ;;  %v1813_v16 = vpop.permute.xlu0 %1812 }
 0x1d7   :  { %1371 = vmatprep.subr.bf16.mxu1 %v2503_v2 }
 0x1d9   :  { %1325 = vmatpush1.bf16.msra.mxu0 %v2420_v17 }
 0x1da   :  { %1372 = vmatpush1.bf16.msra.mxu1 %v2420_v17  ;;  %1326 = vmatprep.subr.bf16.mxu0 %v2503_v2 }
 0x1db   :  { %1373 = vmatprep.subr.bf16.mxu1 %v2503_v2 }
 0x1dd   :  { %1327 = vmatpush1.bf16.msra.mxu0 %v2421_v18 }
 0x1de   :  { %1374 = vmatpush1.bf16.msra.mxu1 %v2421_v18  ;;  %1328 = vmatprep.subr.bf16.mxu0 %v2503_v2 }
 0x1df   :  { %1375 = vmatprep.subr.bf16.mxu1 %v2503_v2 }
 0x1e1   :  { %1329 = vmatpush1.bf16.msra.mxu0 %v2422_v20 }
 0x1e2   :  { %1376 = vmatpush1.bf16.msra.mxu1 %v2422_v20  ;;  %1330 = vmatprep.subr.bf16.mxu0 %v2503_v2 }
 0x1e3   :  { %1377 = vmatprep.subr.bf16.mxu1 %v2503_v2 }
 0x1e5   :  { %1331 = vmatpush1.bf16.msra.mxu0 %v2423_v21 }
 0x1e6   :  { %1378 = vmatpush1.bf16.msra.mxu1 %v2423_v21  ;;  %1332 = vmatprep.subr.bf16.mxu0 %v2503_v2 }
 0x1e7   :  { %1379 = vmatprep.subr.bf16.mxu1 %v2503_v2 }
 0x1e9   :  { %1333 = vmatpush1.bf16.msra.mxu0 %v2424_v22 }
 0x1ea   :  { %1380 = vmatpush1.bf16.msra.mxu1 %v2424_v22  ;;  %1334 = vmatprep.subr.bf16.mxu0 %v2503_v2 }
 0x1eb   :  { %1381 = vmatprep.subr.bf16.mxu1 %v2503_v2 }
 0x1ed   :  { %1335 = vmatpush1.bf16.msra.mxu0 %v1308_v24 }
 0x1ee   :  { %1382 = vmatpush1.bf16.msra.mxu1 %v1308_v24  ;;  %1508 = vmatprep.subr.bf16.mxu0 %v2503_v2 }
 0x1ef   :  { %1555 = vmatprep.subr.bf16.mxu1 %v2503_v2 }
 0x1f0   :  { %1343 = vmatmul.mubr.bf16.vlgmr.msra.gmra.mrb[4].mxu0 %v1226_v26 }
 0x1f1   :  { %1390 = vmatmul.mubr.bf16.vlgmr.msra.gmra.mrb[4].mxu1 %v1351_v27  ;;  %1509 = vmatpush1.bf16.msra.mxu0 %v2426_v25 }
 0x1f2   :  { %2206 = vmatprep.mubr.msk.bf16.mxu0 %vm343_vm2, %v1425_v28  ;;  %1556 = vmatpush1.bf16.msra.mxu1 %v2426_v25 }
 0x1f3   :  { %2207 = vmatprep.mubr.msk.bf16.mxu1 %vm343_vm2, %v1550_v29  ;;  %1510 = vmatprep.subr.bf16.mxu0 %v2503_v2 }
 0x1f4   :  { %1557 = vmatprep.subr.bf16.mxu1 %v2503_v2 }
 0x1f5   :  { %1511 = vmatpush1.bf16.msra.mxu0 %v2427_v30 }
 0x1f6   :  { %1558 = vmatpush1.bf16.msra.mxu1 %v2427_v30  ;;  %1512 = vmatprep.subr.bf16.mxu0 %v2503_v2 }
 0x1f7   :  { %1559 = vmatprep.subr.bf16.mxu1 %v2503_v2 }
 0x1f9   :  { %1513 = vmatpush1.bf16.msra.mxu0 %v2428_v52 }
 0x1fa   :  { %1560 = vmatpush1.bf16.msra.mxu1 %v2428_v52  ;;  %1514 = vmatprep.subr.bf16.mxu0 %v2503_v2 }
 0x1fb   :  { %1561 = vmatprep.subr.bf16.mxu1 %v2503_v2 }
 0x1fd   :  { %1515 = vmatpush1.bf16.msra.mxu0 %v2429_v53 }
 0x1fe   :  { %1562 = vmatpush1.bf16.msra.mxu1 %v2429_v53  ;;  %1516 = vmatprep.subr.bf16.mxu0 %v2503_v2 }
 0x1ff   :  { %1563 = vmatprep.subr.bf16.mxu1 %v2503_v2 }
 0x201   :  { %1517 = vmatpush1.bf16.msra.mxu0 %v2430_v31 }
 0x202   :  { %1564 = vmatpush1.bf16.msra.mxu1 %v2430_v31  ;;  %1518 = vmatprep.subr.bf16.mxu0 %v2503_v2 }
 0x203   :  { %1565 = vmatprep.subr.bf16.mxu1 %v2503_v2 }
 0x205   :  { %1519 = vmatpush1.bf16.msra.mxu0 %v2431_v32 }
 0x206   :  { %1566 = vmatpush1.bf16.msra.mxu1 %v2431_v32  ;;  %1520 = vmatprep.subr.bf16.mxu0 %v2503_v2 }
 0x207   :  { %1567 = vmatprep.subr.bf16.mxu1 %v2503_v2 }
 0x209   :  { %1521 = vmatpush1.bf16.msra.mxu0 %v2432_v33 }
 0x20a   :  { %1568 = vmatpush1.bf16.msra.mxu1 %v2432_v33  ;;  %1522 = vmatprep.subr.bf16.mxu0 %v2503_v2 }
 0x20b   :  { %1569 = vmatprep.subr.bf16.mxu1 %v2503_v2 }
 0x20d   :  { %1523 = vmatpush1.bf16.msra.mxu0 %v2433_v34 }
 0x20e   :  { %1570 = vmatpush1.bf16.msra.mxu1 %v2433_v34  ;;  %1524 = vmatprep.subr.bf16.mxu0 %v2503_v2 }
 0x20f   :  { %1571 = vmatprep.subr.bf16.mxu1 %v2503_v2 }
 0x211   :  { %1525 = vmatpush1.bf16.msra.mxu0 %v2434_v35 }
 0x212   :  { %1572 = vmatpush1.bf16.msra.mxu1 %v2434_v35  ;;  %1526 = vmatprep.subr.bf16.mxu0 %v2503_v2 }
 0x213   :  { %1573 = vmatprep.subr.bf16.mxu1 %v2503_v2 }
 0x215   :  { %1527 = vmatpush1.bf16.msra.mxu0 %v2435_v36 }
 0x216   :  { %1574 = vmatpush1.bf16.msra.mxu1 %v2435_v36  ;;  %1528 = vmatprep.subr.bf16.mxu0 %v2503_v2 }
 0x217   :  { %1575 = vmatprep.subr.bf16.mxu1 %v2503_v2 }
 0x219   :  { %1529 = vmatpush1.bf16.msra.mxu0 %v2436_v37 }
 0x21a   :  { %1576 = vmatpush1.bf16.msra.mxu1 %v2436_v37  ;;  %1530 = vmatprep.subr.bf16.mxu0 %v2503_v2 }
 0x21b   :  { %1577 = vmatprep.subr.bf16.mxu1 %v2503_v2 }
 0x21d   :  { %1531 = vmatpush1.bf16.msra.mxu0 %v2437_v38 }
 0x21e   :  { %1578 = vmatpush1.bf16.msra.mxu1 %v2437_v38  ;;  %1532 = vmatprep.subr.bf16.mxu0 %v2503_v2 }
 0x21f   :  { %1579 = vmatprep.subr.bf16.mxu1 %v2503_v2 }
 0x221   :  { %1533 = vmatpush1.bf16.msra.mxu0 %v1506_v40 }
 0x222   :  { %1580 = vmatpush1.bf16.msra.mxu1 %v1506_v40  ;;  %1706 = vmatprep.subr.bf16.mxu0 %v2503_v2 }
 0x223   :  { %1753 = vmatprep.subr.bf16.mxu1 %v2503_v2 }
 0x224   :  { %1541 = vmatmul.mubr.bf16.vlgmr.msra.gmra.mrb[4].mxu0 %v1424_v42 }
 0x225   :  { %1588 = vmatmul.mubr.bf16.vlgmr.msra.gmra.mrb[4].mxu1 %v1549_v43  ;;  %1707 = vmatpush1.bf16.msra.mxu0 %v2439_v41 }
 0x226   :  { %2246 = vmatprep.mubr.msk.bf16.mxu0 %vm343_vm2, %v1623_v44  ;;  %1754 = vmatpush1.bf16.msra.mxu1 %v2439_v41 }
 0x227   :  { %2247 = vmatprep.mubr.msk.bf16.mxu1 %vm343_vm2, %v1748_v45  ;;  %1708 = vmatprep.subr.bf16.mxu0 %v2503_v2 }
 0x228   :  { %1755 = vmatprep.subr.bf16.mxu1 %v2503_v2 }
 0x229   :  { %1709 = vmatpush1.bf16.msra.mxu0 %v2440_v46 }
 0x22a   :  { %1756 = vmatpush1.bf16.msra.mxu1 %v2440_v46  ;;  %1710 = vmatprep.subr.bf16.mxu0 %v2503_v2 }
 0x22b   :  { %1757 = vmatprep.subr.bf16.mxu1 %v2503_v2 }
 0x22d   :  { %1711 = vmatpush1.bf16.msra.mxu0 %v2441_v50 }
 0x22e   :  { %1758 = vmatpush1.bf16.msra.mxu1 %v2441_v50  ;;  %1712 = vmatprep.subr.bf16.mxu0 %v2503_v2 }
 0x22f   :  { %1759 = vmatprep.subr.bf16.mxu1 %v2503_v2 }
 0x231   :  { %1713 = vmatpush1.bf16.msra.mxu0 %v2442_v51 }
 0x232   :  { %1760 = vmatpush1.bf16.msra.mxu1 %v2442_v51  ;;  %1714 = vmatprep.subr.bf16.mxu0 %v2503_v2 }
 0x233   :  { %1761 = vmatprep.subr.bf16.mxu1 %v2503_v2 }
 0x235   :  { %1715 = vmatpush1.bf16.msra.mxu0 %v2443_v55 }
 0x236   :  { %1762 = vmatpush1.bf16.msra.mxu1 %v2443_v55  ;;  %1716 = vmatprep.subr.bf16.mxu0 %v2503_v2 }
 0x237   :  { %1763 = vmatprep.subr.bf16.mxu1 %v2503_v2 }
 0x239   :  { %1717 = vmatpush1.bf16.msra.mxu0 %v2444_v56 }
 0x23a   :  { %1764 = vmatpush1.bf16.msra.mxu1 %v2444_v56  ;;  %1718 = vmatprep.subr.bf16.mxu0 %v2503_v2 }
 0x23b   :  { %1765 = vmatprep.subr.bf16.mxu1 %v2503_v2 }
 0x23d   :  { %1719 = vmatpush1.bf16.msra.mxu0 %v2445_v47 }
 0x23e   :  { %1766 = vmatpush1.bf16.msra.mxu1 %v2445_v47  ;;  %1720 = vmatprep.subr.bf16.mxu0 %v2503_v2 }
 0x23f   :  { %1767 = vmatprep.subr.bf16.mxu1 %v2503_v2 }
 0x241   :  { %1721 = vmatpush1.bf16.msra.mxu0 %v2446_v48 }
 0x242   :  { %1768 = vmatpush1.bf16.msra.mxu1 %v2446_v48  ;;  %1722 = vmatprep.subr.bf16.mxu0 %v2503_v2 }
 0x243   :  { %1769 = vmatprep.subr.bf16.mxu1 %v2503_v2 }
 0x245   :  { %1723 = vmatpush1.bf16.msra.mxu0 %v2447_v49 }
 0x246   :  { %1770 = vmatpush1.bf16.msra.mxu1 %v2447_v49  ;;  %1724 = vmatprep.subr.bf16.mxu0 %v2503_v2 }
 0x247   :  { %1771 = vmatprep.subr.bf16.mxu1 %v2503_v2 }
 0x249   :  { %1725 = vmatpush1.bf16.msra.mxu0 %v2448_v57 }
 0x24a   :  { %1772 = vmatpush1.bf16.msra.mxu1 %v2448_v57  ;;  %1726 = vmatprep.subr.bf16.mxu0 %v2503_v2 }
 0x24b   :  { %1773 = vmatprep.subr.bf16.mxu1 %v2503_v2 }
 0x24d   :  { %1727 = vmatpush1.bf16.msra.mxu0 %v2449_v59 }
 0x24e   :  { %1774 = vmatpush1.bf16.msra.mxu1 %v2449_v59  ;;  %1728 = vmatprep.subr.bf16.mxu0 %v2503_v2 }
 0x24f   :  { %1775 = vmatprep.subr.bf16.mxu1 %v2503_v2 }
 0x251   :  { %1729 = vmatpush1.bf16.msra.mxu0 %v2450_v60 }
 0x252   :  { %1776 = vmatpush1.bf16.msra.mxu1 %v2450_v60  ;;  %1730 = vmatprep.subr.bf16.mxu0 %v2503_v2 }
 0x253   :  { %1777 = vmatprep.subr.bf16.mxu1 %v2503_v2  ;;  %v2453_v2 = vld [vmem:[%s3257_s6 + $0x8] sm:$0xff]   ;;  %s2507_s6 = smov [#allocation2]  }
 0x254   :  { %s1908_s22 = sshll.u32 %s2507_s6, 4  ;;  %s1909_s22 = int_to_ptr.vmem [resolvable:$true] %s1908_s22 }
 0x255   :  { %1731 = vmatpush1.bf16.msra.mxu0 %v1704_v62  ;;  %s2455_s4 = scalar_lea.vmem %s1909_s22, 32  ;;  %p2460_p1 = scmp.lt.s32.totalorder %s1909_s22, %s1909_s22 }
 0x256   :  { %1778 = vmatpush1.bf16.msra.mxu1 %v1704_v62  ;;  %2258 = vmatprep.subr.bf16.mxu0 %v2505_v0  ;;  %p2456_p0 = scmp.ne.s32.totalorder %s1909_s22, %s2455_s4  ;;  %p2461_p2 = scmp.lt.s32.totalorder %s2455_s4, %s2455_s4 }
 0x258   :  { %1739 = vmatmul.mubr.bf16.vlgmr.msra.gmra.mrb[4].mxu0 %v1622_v63  ;;  %p2462_p3 = por %p2461_p2, %p2460_p1 }
 0x259   :  { %1786 = vmatmul.mubr.bf16.vlgmr.msra.gmra.mrb[4].mxu1 %v1747_v1  ;;  %2259 = vmatpush3.bf16.msra.mxu0 %v2452_v3 }
 0x25a   :  { %2260 = vmatprep.subr.bf16.mxu0 %v2505_v0  ;;  %2264 = vmatprep.mubr.msk.bf16.mxu0 %vm2506_vm4, %v2505_v0  ;;  %p2463_p4 = pnand %p2462_p3, %p2456_p0 }
 0x25d   :  { %2261 = vmatpush3.bf16.msra.mxu0 %v2453_v2 }
 0x25e   :  { %2262 = vmatprep.subr.bf16.mxu0 %v2505_v0 }
 0x261   :  { %2263 = vmatpush3.bf16.msra.mxu0 %v1851_v58 }
 0x32b   :  { %v1740_v4 = vpop.f32.mrb[4].mxu0 }
 0x32c   :  { %v1787_v5 = vpop.f32.mrb[4].mxu1  ;;  %v1742_v6 = vpop.f32.mrb[5].mxu0 }
 0x32d   :  { %v1795_v7 = vrot.slane %v1787_v5, 7  ;;  %v1789_v9 = vpop.f32.mrb[5].mxu1  ;;  %v1743_v10 = vpop.f32.mrb[6].mxu0 }
 0x32e   :  { %v1790_v11 = vpop.f32.mrb[6].mxu1  ;;  %v1744_v12 = vpop.f32.mrb[7].mxu0 }
 0x32f   :  { %v1798_v13 = vsel %vm1797_vm5, %v1740_v4, %v1795_v7  ;;  %v1791_v14 = vpop.f32.mrb[7].mxu1 }
 0x330   :  { %v1806_v15 = vadd.f32 %v2248_v8, %v1798_v13 }
 0x332   :  { %v1807_v17 = vmax.f32 %v1806_v15, 0.0 }
 0x334   :  { %v1816_v18 = vsel %vm1815_vm6, %v1807_v17, %v1813_v16  ;;  %1809 = vst.msk [vmem:[#allocation2] sm:$0x3] %vm1808_vm7, %v1807_v17 }
 0x335   :  { %v1817_v19 = vpack.c.bf16 %v1816_v18, %v1816_v18 }
 0x337   :  { %2265 = vmatmul.mubr.msk.bf16.vlgmr.msra.gmra.mrb[8].mxu0 %vm1845_vm8, %v1817_v19 }
 0x338   :  { %2466 = shalt.err (!%p2463_p4)
}
 0x339   :  { %s2467_s25 = scalar_lea.hbm %s3260_s9, 32 }
 0x33a   :  { %p2468_p5 = scmp.ne.s32.totalorder %s3260_s9, %s2467_s25  ;;  %p2471_p6 = scmp.lt.u32.totalorder %s2467_s25, %s3260_s9 }
 0x33c   :  { %p2473_p7 = pnand %p2471_p6, %p2468_p5 }
 0x33e   :  { %2476 = shalt.err (!%p2473_p7)
}
 0x33f   :  { %1911 = dma.vmem_to_hbm [thread:$0]  %s1909_s22, 32, %s3260_s9, [#allocation3]   ;;  %v2249_v20 = vld [vmem:[%s3258_s7] ss:$0 sm:$0xff]  ;;  %vm1893_vm9 = vcmask 1024  }
 0x340   :  { %s2508_s0 = smov 127   ;;  %s2509_s15 = smov [#allocation4]  }
 0x341   :  { %s1918_s16 = sshll.u32 %s2509_s15, 4  ;;  %s1919_s16 = int_to_ptr.vmem [resolvable:$true] %s1918_s16 }
 0x342   :  { %s2477_s9 = scalar_lea.vmem %s1919_s16, 32  ;;  %p2482_p9 = scmp.lt.s32.totalorder %s1919_s16, %s1919_s16 }
 0x343   :  { %p2478_p8 = scmp.ne.s32.totalorder %s1919_s16, %s2477_s9  ;;  %p2483_p10 = scmp.lt.s32.totalorder %s2477_s9, %s2477_s9 }
 0x345   :  { %p2484_p11 = por %p2483_p10, %p2482_p9 }
 0x347   :  { %p2485_p12 = pnand %p2484_p11, %p2478_p8 }
 0x40a   :  { %v1887_v21 = vpop.f32.mrb[8].mxu0 }
 0x40b   :  { %v1888_v22 = vadd.f32 %v2249_v20, %v1887_v21  ;;  %v2266_v23 = vpop.f32.mrb[9].mxu0 }
 0x40c   :  { %v1890_v24 = vpop.f32.mrb[10].mxu0 }
 0x40d   :  { %1894 = vst.msk [vmem:[%s3259_s8] sm:$0x3] %vm1893_vm9, %v1888_v22  ;;  %1896 = vrot.lane.b32.xlu1 %v1888_v22, %s2508_s0  ;;  %v2267_v25 = vpop.f32.mrb[11].mxu0 }
 0x47f   :  { %v1897_v26 = vpop.permute.xlu1 %1896 }
 0x480   :  { %1899 = vst.msk [vmem:[#allocation4] sm:$0x3] %vm1808_vm7, %v1897_v26 }
 0x481   :  { %2488 = shalt.err (!%p2485_p12)
}
 0x482   :  { %s2489_s8 = scalar_lea.hbm %s3261_s10, 32 }
 0x483   :  { %p2490_p13 = scmp.ne.s32.totalorder %s3261_s10, %s2489_s8  ;;  %p2493_p0 = scmp.lt.u32.totalorder %s2489_s8, %s3261_s10 }
 0x485   :  { %p2495_p1 = pnand %p2493_p0, %p2490_p13 }
 0x487   :  { %2498 = shalt.err (!%p2495_p1)
}
 0x488   :  { %1921 = dma.vmem_to_hbm [thread:$0]  %s1919_s16, 32, %s3261_s10, [#allocation5]  }
 0x489   :  { %2499 = dma.done.wait [#allocation3], 32  }
 0x48a   :  { %2500 = vsyncadd [#allocation3], 4294967264 }
 0x48b   :  { %2501 = dma.done.wait [#allocation5], 32  }
 0x48c   :  { %2502 = vsyncadd [#allocation5], 4294967264 }
 0x48d   :  { %1930 = vsyncpa [#allocation3], 1 }
 0x48e   :  { %1931 = vsyncpa [#allocation5], 1 }

</bundles_post_ra>
